<compile_context>
chip_gen: v5e
topology: v5e:2x2
jax: 0.10.0
libtpu: 0.0.40
codegen_flags: <defaults>
</compile_context>

<pallas_src>
import functools

import numpy as np
import jax
import jax.numpy as jnp
from jax import lax
from jax.experimental import pallas as pl
from jax.experimental.pallas import tpu as pltpu


# ----------------------------------------------------------------------------
# Kernel 1: downconv (2x2x2, stride 2) + PReLU.  One GEMM per (n, d) plane,
# written straight into the zero-halo padded layout used by kernel 2.
#   xc_ref : (1, 1, 8*Cin, Lq)  patch columns for plane d-2  (Lq = Ho*Wp)
#   w_ref  : (Cout, 8*Cin)
#   b_ref  : (Cout, 1)
#   a_ref  : (1, 1)             PReLU slope
#   m_ref  : (1, Lq)            1.0 on valid cols (w < Wo), 0.0 on halo cols
#   o_ref  : (1, 1, Cout, Lp)   padded plane, Lp = (Ho+5)*Wp, Wp = Wo+4
# grid = (N, Do+4); planes with d<2 or d>=Do+2 are the zero depth halo.
# ----------------------------------------------------------------------------
def _downconv_kernel(xc_ref, w_ref, b_ref, a_ref, m_ref, o_ref, *, do, ho, wo):
    d = pl.program_id(1)
    wp = wo + 4
    lq = ho * wp
    lp = (ho + 5) * wp
    roff = 2 * wp + 2
    cout = o_ref.shape[2]
    is_valid = jnp.logical_and(d >= 2, d < do + 2)

    @pl.when(jnp.logical_not(is_valid))
    def _():                                    # depth-halo plane: all zeros
        o_ref[0, 0] = jnp.zeros((cout, lp), jnp.float32)

    @pl.when(is_valid)
    def _():
        # zero only the top/bottom halo lanes; the middle is written below.
        o_ref[0, 0, :, 0:roff] = jnp.zeros((cout, roff), jnp.float32)
        o_ref[0, 0, :, roff + lq:lp] = jnp.zeros((cout, lp - roff - lq),
                                                 jnp.float32)
        v = jnp.dot(w_ref[...], xc_ref[0, 0],
                    preferred_element_type=jnp.float32) + b_ref[...]
        y = jnp.where(v >= 0.0, v, a_ref[...] * v)          # PReLU
        y = y * m_ref[...]                                   # zero halo columns
        o_ref[0, 0, :, roff:roff + lq] = y


def downconv_prelu(xcols, w, b, alpha, mask, *, do, ho, wo):
    n, _, k, lq = xcols.shape
    cout = w.shape[0]
    wp = wo + 4
    lp = (ho + 5) * wp
    dp = do + 4
    kernel = functools.partial(_downconv_kernel, do=do, ho=ho, wo=wo)
    return pl.pallas_call(
        kernel,
        out_shape=jax.ShapeDtypeStruct((n, dp, cout, lp), jnp.float32),
        grid=(n, dp),
        in_specs=[
            pl.BlockSpec(
                (1, 1, k, lq),
                lambda i, d: (i, jnp.minimum(jnp.maximum(d - 2, 0), do - 1), 0, 0)),
            pl.BlockSpec((cout, k), lambda i, d: (0, 0)),
            pl.BlockSpec((cout, 1), lambda i, d: (0, 0)),
            pl.BlockSpec((1, 1), lambda i, d: (0, 0)),
            pl.BlockSpec((1, lq), lambda i, d: (0, 0)),
        ],
        out_specs=pl.BlockSpec((1, 1, cout, lp), lambda i, d: (i, d, 0, 0)),
        compiler_params=pltpu.CompilerParams(
            dimension_semantics=("parallel", "parallel"),
            vmem_limit_bytes=64 * 1024 * 1024,
        ),
    )(xcols, w, b, alpha, mask)


# ----------------------------------------------------------------------------
# Kernel 2: 5x5x5 conv (padding 2) + PReLU, padded-layout in -> padded-layout
# out, residual add fused into the last layer.
#   xp_ref : (1, Dp, C, Lp)     zero-halo volume, resident across the d axis
#   w_ref  : (25, Cout, 5*Cin)  tap t = kd*5+kh, K index = kw*Cin + ci
#   b_ref  : (Cout, 1)
#   a_ref  : (1, 1)
#   m_ref  : (1, Lq)            valid-column mask
#   res_ref: (1, 1, C, Lp)      (only when with_res) padded downconv plane d
#   o_ref  : (1, 1, Cout, Lp)   padded output plane d
# grid = (N, Dp); per (kd, kh) one (Cout, 5*Cin) @ (5*Cin, chunk) matmul.
# ----------------------------------------------------------------------------
def _conv5_kernel(xp_ref, w_ref, b_ref, a_ref, m_ref, *rest,
                  do, ho, wo, chunk, with_res):
    if with_res:
        res_ref, o_ref = rest
    else:
        (o_ref,) = rest
    d = pl.program_id(1)
    wp = wo + 4
    lq = ho * wp
    lp = (ho + 5) * wp
    roff = 2 * wp + 2
    cout = o_ref.shape[2]
    dd = d - 2
    is_valid = jnp.logical_and(d >= 2, d < do + 2)

    @pl.when(jnp.logical_not(is_valid))
    def _():                                    # depth-halo plane: all zeros
        o_ref[0, 0] = jnp.zeros((cout, lp), jnp.float32)

    @pl.when(is_valid)
    def _():
        o_ref[0, 0, :, 0:roff] = jnp.zeros((cout, roff), jnp.float32)
        o_ref[0, 0, :, roff + lq:lp] = jnp.zeros((cout, lp - roff - lq),
                                                 jnp.float32)
        bias = b_ref[...]
        alpha = a_ref[...]
        for c0 in range(0, lq, chunk):          # static lane chunks
            cl = min(chunk, lq - c0)

            def kd_body(kd, acc):
                for kh in range(5):             # inner taps unrolled
                    s0 = c0 + kh * wp
                    pieces = [xp_ref[0, dd + kd, :, s0 + kw:s0 + kw + cl]
                              for kw in range(5)]
                    slab = jnp.concatenate(pieces, axis=0)      # (5*Cin, cl)
                    acc = acc + jnp.dot(w_ref[kd * 5 + kh], slab,
                                        preferred_element_type=jnp.float32)
                return acc

            acc = lax.fori_loop(0, 5, kd_body,
                                jnp.zeros((cout, cl), jnp.float32))
            v = acc + bias
            y = jnp.where(v >= 0.0, v, alpha * v)               # PReLU
            y = y * m_ref[:, c0:c0 + cl]                        # halo cols -> 0
            if with_res:
                y = y + res_ref[0, 0, :, roff + c0:roff + c0 + cl]  # fused +y0
            o_ref[0, 0, :, roff + c0:roff + c0 + cl] = y


def conv5_prelu(xp, w5, b, alpha, mask, res, *, do, ho, wo):
    n, dp, c, lp = xp.shape
    wp = wo + 4
    lq = ho * wp
    cout = w5.shape[1]
    # bound the accumulator footprint to ~16 f32 vregs per chunk
    chunk = min(lq, max(128, (16 * 8 * 128) // max(cout, 8)))
    kernel = functools.partial(_conv5_kernel, do=do, ho=ho, wo=wo,
                               chunk=chunk, with_res=res is not None)
    in_specs = [
        pl.BlockSpec((1, dp, c, lp), lambda i, d: (i, 0, 0, 0)),
        pl.BlockSpec((25, cout, 5 * c), lambda i, d: (0, 0, 0)),
        pl.BlockSpec((cout, 1), lambda i, d: (0, 0)),
        pl.BlockSpec((1, 1), lambda i, d: (0, 0)),
        pl.BlockSpec((1, lq), lambda i, d: (0, 0)),
    ]
    args = [xp, w5, b, alpha, mask]
    if res is not None:
        in_specs.append(pl.BlockSpec((1, 1, c, lp), lambda i, d: (i, d, 0, 0)))
        args.append(res)
    return pl.pallas_call(
        kernel,
        out_shape=jax.ShapeDtypeStruct((n, dp, cout, lp), jnp.float32),
        grid=(n, dp),
        in_specs=in_specs,
        out_specs=pl.BlockSpec((1, 1, cout, lp), lambda i, d: (i, d, 0, 0)),
        compiler_params=pltpu.CompilerParams(
            dimension_semantics=("parallel", "parallel"),
            vmem_limit_bytes=64 * 1024 * 1024,
        ),
    )(*args)


# ----------------------------------------------------------------------------
# Wrapper glue (small XLA ops: one patch gather of x, one final unpad).
# ----------------------------------------------------------------------------
def down_forward(params, x):
    """x: (N, Cin, D, H, W) float32 -> (N, Cout, D//2, H//2, W//2)."""
    n, cin, d, h, w = x.shape
    cout = params["wd"].shape[0]
    do, ho, wo = d // 2, h // 2, w // 2
    wp, hp, dp = wo + 4, ho + 5, do + 4
    lq, lp = ho * wp, hp * wp

    # --- 2x2x2 stride-2 patch columns for the downconv GEMM -----------------
    # TODO(synk): move this gather into kernel 1 to save one HBM pass over x.
    xr = x.reshape(n, cin, do, 2, ho, 2, wo, 2)
    xr = jnp.transpose(xr, (0, 2, 1, 3, 5, 7, 4, 6))   # (N,Do,Cin,2,2,2,Ho,Wo)
    xc = xr.reshape(n, do, cin * 8, ho, wo)
    xc = jnp.pad(xc, ((0, 0), (0, 0), (0, 0), (0, 0), (0, 4)))  # Wo -> Wp cols
    xcols = xc.reshape(n, do, cin * 8, lq)

    # lane mask: 1.0 on valid output columns (w < Wo), 0.0 on the 4 halo cols
    mask = jnp.asarray(
        np.tile(np.arange(wp) < wo, ho).astype(np.float32)).reshape(1, lq)

    wd = params["wd"].reshape(cout, cin * 8)
    bd = params["bd"].reshape(cout, 1)
    ad = params["ad"].reshape(1, 1)

    # padded downconv output (residual source and first RepeatConv input)
    xp0 = downconv_prelu(xcols, wd, bd, ad, mask, do=do, ho=ho, wo=wo)

    def unpad(xp):
        y = xp.reshape(n, dp, cout, hp, wp)
        return y[:, 2:2 + do, :, 2:2 + ho, 2:2 + wo]   # (N, Do, Cout, Ho, Wo)

    n_layers = len(params["conv_w"])
    if n_layers == 0:                     # RepeatConv is identity -> y0 + y0
        return jnp.transpose(2.0 * unpad(xp0), (0, 2, 1, 3, 4))

    xp = xp0
    for li in range(n_layers):
        last = li == n_layers - 1
        # pre-pack weights as (25, Cout, 5*Cin): tap t = kd*5+kh, K = kw*Cin+ci
        w5 = jnp.transpose(params["conv_w"][li],
                           (2, 3, 0, 4, 1)).reshape(25, cout, 5 * cout)
        b5 = params["conv_b"][li].reshape(cout, 1)
        a5 = params["conv_a"][li].reshape(1, 1)
        xp = conv5_prelu(xp, w5, b5, a5, mask, xp0 if last else None,
                         do=do, ho=ho, wo=wo)

    return jnp.transpose(unpad(xp), (0, 2, 1, 3, 4))   # NCDHW


# ----------------------------------------------------------------------------
# Deterministic synthetic parameters (match the nn.Module layer shapes).
# ----------------------------------------------------------------------------
def init_params(key, in_channels, out_channels, n_conv):
    ks = jax.random.split(key, 2 + 2 * n_conv)
    std_d = 1.0 / np.sqrt(in_channels * 8)
    std_c = 1.0 / np.sqrt(out_channels * 125)
    params = {
        "wd": std_d * jax.random.normal(
            ks[0], (out_channels, in_channels, 2, 2, 2), jnp.float32),
        "bd": 0.1 * jax.random.normal(ks[1], (out_channels,), jnp.float32),
        "ad": jnp.asarray(0.25, jnp.float32),          # nn.PReLU() default
        "conv_w": [], "conv_b": [], "conv_a": [],
    }
    for i in range(n_conv):
        params["conv_w"].append(
            std_c * jax.random.normal(
                ks[2 + 2 * i], (out_channels, out_channels, 5, 5, 5), jnp.float32))
        params["conv_b"].append(
            0.1 * jax.random.normal(ks[3 + 2 * i], (out_channels,), jnp.float32))
        params["conv_a"].append(jnp.asarray(0.2 + 0.05 * i, jnp.float32))
    return params


# ----------------------------------------------------------------------------
# Pure-JAX reference (XLA convs) for the correctness check.
# ----------------------------------------------------------------------------
def reference_forward(params, x):
    dn = ("NCDHW", "OIDHW", "NCDHW")
    hi = jax.lax.Precision.HIGHEST
    cout = params["wd"].shape[0]

    def prelu(v, a):
        return jnp.where(v >= 0.0, v, a * v)

    y0 = lax.conv_general_dilated(x, params["wd"], (2, 2, 2), "VALID",
                                  dimension_numbers=dn, precision=hi)
    y0 = prelu(y0 + params["bd"].reshape(1, cout, 1, 1, 1), params["ad"])
    y = y0
    for wc, bc, ac in zip(params["conv_w"], params["conv_b"], params["conv_a"]):
        y = lax.conv_general_dilated(y, wc, (1, 1, 1),
                                     ((2, 2), (2, 2), (2, 2)),
                                     dimension_numbers=dn, precision=hi)
        y = prelu(y + bc.reshape(1, cout, 1, 1, 1), ac)
    return y0 + y


if __name__ == "__main__":
    key = jax.random.PRNGKey(0)
    kx, kp = jax.random.split(key)

    N, Cin, Cout, n_conv = 2, 4, 8, 2
    D = H = W = 16
    x = jax.random.normal(kx, (N, Cin, D, H, W), jnp.float32)
    params = init_params(kp, Cin, Cout, n_conv)

    down_fn = jax.jit(down_forward)
    out = jax.block_until_ready(down_fn(params, x))

    ref = jax.block_until_ready(jax.jit(reference_forward)(params, x))
    assert out.shape == (N, Cout, D // 2, H // 2, W // 2)
    if not np.allclose(np.asarray(out), np.asarray(ref), atol=1e-2, rtol=1e-2):
        err = float(np.max(np.abs(np.asarray(out) - np.asarray(ref))))
        raise SystemExit(f"mismatch vs reference, max abs err = {err}")
    print("KERNEL_OK")
</pallas_src>

<mosaic_0001>
module attributes {stable_mosaic.version = 11 : i64} {
  func.func @_downconv_kernel(%arg0: i32, %arg1: i32, %arg2: memref<1x1x32x96xf32, #tpu.memory_space<vmem>>, %arg3: memref<8x32xf32, #tpu.memory_space<vmem>>, %arg4: memref<8x1xf32, #tpu.memory_space<vmem>>, %arg5: memref<1x1xf32, #tpu.memory_space<vmem>>, %arg6: memref<1x96xf32, #tpu.memory_space<vmem>>, %arg7: memref<1x1x8x156xf32, #tpu.memory_space<vmem>>) attributes {dimension_semantics = [#tpu.dimension_semantics<parallel>, #tpu.dimension_semantics<parallel>], iteration_bounds = array<i64: 2, 12>, scalar_prefetch = 0 : i64, scratch_operands = 0 : i64, tpu.core_type = #tpu.core_type<tc>, window_params = [{transform_indices = @transform_0, window_bounds = array<i64: 1, 1, 32, 96>}, {pipeline_mode = #tpu.pipeline_mode<synchronous>, transform_indices = @transform_1, window_bounds = array<i64: 8, 32>}, {pipeline_mode = #tpu.pipeline_mode<synchronous>, transform_indices = @transform_2, window_bounds = array<i64: 8, 1>}, {pipeline_mode = #tpu.pipeline_mode<synchronous>, transform_indices = @transform_3, window_bounds = array<i64: 1, 1>}, {pipeline_mode = #tpu.pipeline_mode<synchronous>, transform_indices = @transform_4, window_bounds = array<i64: 1, 96>}, {transform_indices = @transform_5, window_bounds = array<i64: 1, 1, 8, 156>}]} {
    %c2_i32 = arith.constant 2 : i32
    %0 = arith.cmpi sge, %arg1, %c2_i32 : i32
    %c10_i32 = arith.constant 10 : i32
    %1 = arith.cmpi slt, %arg1, %c10_i32 : i32
    %2 = arith.andi %0, %1 : i1
    %true = arith.constant true
    %3 = arith.xori %2, %true : i1
    %4 = arith.extui %3 : i1 to i32
    %c0_i32 = arith.constant 0 : i32
    %5 = arith.cmpi ne, %4, %c0_i32 : i32
    scf.if %5 {
      %cst = arith.constant 0.000000e+00 : f32
      %8 = vector.broadcast %cst : f32 to vector<8x156xf32>
      %c0 = arith.constant 0 : index
      %c0_1 = arith.constant 0 : index
      %c0_2 = arith.constant 0 : index
      %c0_3 = arith.constant 0 : index
      %9 = vector.load %arg7[%c0, %c0_1, %c0_2, %c0_3] : memref<1x1x8x156xf32, #tpu.memory_space<vmem>>, vector<1x1x8x156xf32>
      %10 = vector.shape_cast %9 : vector<1x1x8x156xf32> to vector<8x156xf32>
      %11 = vector.shape_cast %8 : vector<8x156xf32> to vector<1x1x8x156xf32>
      tpu.vector_store %arg7[%c0, %c0_1, %c0_2, %c0_3], %11 {strides = array<i32>} : memref<1x1x8x156xf32, #tpu.memory_space<vmem>>, vector<1x1x8x156xf32>,
    } else {
    }
    %6 = arith.extui %2 : i1 to i32
    %c0_i32_0 = arith.constant 0 : i32
    %7 = arith.cmpi ne, %6, %c0_i32_0 : i32
    scf.if %7 {
      %cst = arith.constant 0.000000e+00 : f32
      %8 = vector.broadcast %cst : f32 to vector<8x26xf32>
      %c0 = arith.constant 0 : index
      %c0_1 = arith.constant 0 : index
      %c0_2 = arith.constant 0 : index
      %c0_3 = arith.constant 0 : index
      %9 = vector.load %arg7[%c0, %c0_1, %c0_2, %c0_3] : memref<1x1x8x156xf32, #tpu.memory_space<vmem>>, vector<1x1x8x26xf32>
      %10 = vector.shape_cast %9 : vector<1x1x8x26xf32> to vector<8x26xf32>
      %11 = vector.shape_cast %8 : vector<8x26xf32> to vector<1x1x8x26xf32>
      tpu.vector_store %arg7[%c0, %c0_1, %c0_2, %c0_3], %11 {strides = array<i32>} : memref<1x1x8x156xf32, #tpu.memory_space<vmem>>, vector<1x1x8x26xf32>,
      %cst_4 = arith.constant 0.000000e+00 : f32
      %12 = vector.broadcast %cst_4 : f32 to vector<8x34xf32>
      %c0_5 = arith.constant 0 : index
      %c0_6 = arith.constant 0 : index
      %c0_7 = arith.constant 0 : index
      %c122 = arith.constant 122 : index
      %13 = vector.load %arg7[%c0_5, %c0_6, %c0_7, %c122] : memref<1x1x8x156xf32, #tpu.memory_space<vmem>>, vector<1x1x8x34xf32>
      %14 = vector.shape_cast %13 : vector<1x1x8x34xf32> to vector<8x34xf32>
      %15 = vector.shape_cast %12 : vector<8x34xf32> to vector<1x1x8x34xf32>
      tpu.vector_store %arg7[%c0_5, %c0_6, %c0_7, %c122], %15 {strides = array<i32>} : memref<1x1x8x156xf32, #tpu.memory_space<vmem>>, vector<1x1x8x34xf32>,
      %c0_8 = arith.constant 0 : index
      %c0_9 = arith.constant 0 : index
      %16 = vector.load %arg3[%c0_8, %c0_9] : memref<8x32xf32, #tpu.memory_space<vmem>>, vector<8x32xf32>
      %c0_10 = arith.constant 0 : index
      %c0_11 = arith.constant 0 : index
      %c0_12 = arith.constant 0 : index
      %c0_13 = arith.constant 0 : index
      %17 = vector.load %arg2[%c0_10, %c0_11, %c0_12, %c0_13] : memref<1x1x32x96xf32, #tpu.memory_space<vmem>>, vector<1x1x32x96xf32>
      %18 = vector.shape_cast %17 : vector<1x1x32x96xf32> to vector<32x96xf32>
      %cst_14 = arith.constant dense<0.000000e+00> : vector<8x96xf32>
      %19 = tpu.matmul %16, %18, %cst_14 {dimension_numbers = #tpu.dot_dimension_numbers<[1], [0], [0], [1], [0, 0, 1, 1], [], []>} : vector<8x32xf32>, vector<32x96xf32>, vector<8x96xf32> -> vector<8x96xf32>
      %c0_15 = arith.constant 0 : index
      %c0_16 = arith.constant 0 : index
      %20 = vector.load %arg4[%c0_15, %c0_16] : memref<8x1xf32, #tpu.memory_space<vmem>>, vector<8x1xf32>
      %21 = vector.broadcast %20 : vector<8x1xf32> to vector<8x96xf32>
      %22 = arith.addf %19, %21 : vector<8x96xf32>
      %cst_17 = arith.constant 0.000000e+00 : f32
      %23 = vector.broadcast %cst_17 : f32 to vector<8x96xf32>
      %24 = arith.cmpf oge, %22, %23 : vector<8x96xf32>
      %c0_18 = arith.constant 0 : index
      %c0_19 = arith.constant 0 : index
      %25 = vector.load %arg5[%c0_18, %c0_19] : memref<1x1xf32, #tpu.memory_space<vmem>>, vector<1x1xf32>
      %26 = vector.broadcast %25 : vector<1x1xf32> to vector<8x96xf32>
      %27 = arith.mulf %26, %22 : vector<8x96xf32>
      %28 = arith.select %24, %22, %27 : vector<8x96xi1>, vector<8x96xf32>
      %c0_20 = arith.constant 0 : index
      %c0_21 = arith.constant 0 : index
      %29 = vector.load %arg6[%c0_20, %c0_21] : memref<1x96xf32, #tpu.memory_space<vmem>>, vector<1x96xf32>
      %30 = vector.broadcast %29 : vector<1x96xf32> to vector<8x96xf32>
      %31 = arith.mulf %28, %30 : vector<8x96xf32>
      %c0_22 = arith.constant 0 : index
      %c0_23 = arith.constant 0 : index
      %c0_24 = arith.constant 0 : index
      %c26 = arith.constant 26 : index
      %32 = vector.load %arg7[%c0_22, %c0_23, %c0_24, %c26] : memref<1x1x8x156xf32, #tpu.memory_space<vmem>>, vector<1x1x8x96xf32>
      %33 = vector.shape_cast %32 : vector<1x1x8x96xf32> to vector<8x96xf32>
      %34 = vector.shape_cast %31 : vector<8x96xf32> to vector<1x1x8x96xf32>
      tpu.vector_store %arg7[%c0_22, %c0_23, %c0_24, %c26], %34 {strides = array<i32>} : memref<1x1x8x156xf32, #tpu.memory_space<vmem>>, vector<1x1x8x96xf32>,
    } else {
    }
    return
  }
  func.func @transform_0(%arg0: i32, %arg1: i32) -> (i32, i32, i32, i32) {
    %c2_i32 = arith.constant 2 : i32
    %0 = arith.subi %arg1, %c2_i32 : i32
    %c0_i32 = arith.constant 0 : i32
    %1 = arith.maxsi %0, %c0_i32 : i32
    %c7_i32 = arith.constant 7 : i32
    %2 = arith.minsi %1, %c7_i32 : i32
    %c0_i32_0 = arith.constant 0 : i32
    %c0_i32_1 = arith.constant 0 : i32
    %c0_i32_2 = arith.constant 0 : i32
    return %arg0, %2, %c0_i32_0, %c0_i32_1 : i32, i32, i32, i32
  }
  func.func @transform_1(%arg0: i32, %arg1: i32) -> (i32, i32) {
    %c0_i32 = arith.constant 0 : i32
    %c0_i32_0 = arith.constant 0 : i32
    %c0_i32_1 = arith.constant 0 : i32
    return %c0_i32, %c0_i32_0 : i32, i32
  }
  func.func @transform_2(%arg0: i32, %arg1: i32) -> (i32, i32) {
    %c0_i32 = arith.constant 0 : i32
    %c0_i32_0 = arith.constant 0 : i32
    %c0_i32_1 = arith.constant 0 : i32
    return %c0_i32, %c0_i32_0 : i32, i32
  }
  func.func @transform_3(%arg0: i32, %arg1: i32) -> (i32, i32) {
    %c0_i32 = arith.constant 0 : i32
    %c0_i32_0 = arith.constant 0 : i32
    %c0_i32_1 = arith.constant 0 : i32
    return %c0_i32, %c0_i32_0 : i32, i32
  }
  func.func @transform_4(%arg0: i32, %arg1: i32) -> (i32, i32) {
    %c0_i32 = arith.constant 0 : i32
    %c0_i32_0 = arith.constant 0 : i32
    %c0_i32_1 = arith.constant 0 : i32
    return %c0_i32, %c0_i32_0 : i32, i32
  }
  func.func @transform_5(%arg0: i32, %arg1: i32) -> (i32, i32, i32, i32) {
    %c0_i32 = arith.constant 0 : i32
    %c0_i32_0 = arith.constant 0 : i32
    %c0_i32_1 = arith.constant 0 : i32
    return %arg0, %arg1, %c0_i32, %c0_i32_0 : i32, i32, i32, i32
  }
}

module attributes {stable_mosaic.version = 11 : i64} {
  func.func @_conv5_kernel(%arg0: i32, %arg1: i32, %arg2: memref<1x12x8x156xf32, #tpu.memory_space<vmem>>, %arg3: memref<25x8x40xf32, #tpu.memory_space<vmem>>, %arg4: memref<8x1xf32, #tpu.memory_space<vmem>>, %arg5: memref<1x1xf32, #tpu.memory_space<vmem>>, %arg6: memref<1x96xf32, #tpu.memory_space<vmem>>, %arg7: memref<1x1x8x156xf32, #tpu.memory_space<vmem>>) attributes {dimension_semantics = [#tpu.dimension_semantics<parallel>, #tpu.dimension_semantics<parallel>], iteration_bounds = array<i64: 2, 12>, scalar_prefetch = 0 : i64, scratch_operands = 0 : i64, tpu.core_type = #tpu.core_type<tc>, window_params = [{transform_indices = @transform_0, window_bounds = array<i64: 1, 12, 8, 156>}, {pipeline_mode = #tpu.pipeline_mode<synchronous>, transform_indices = @transform_1, window_bounds = array<i64: 25, 8, 40>}, {pipeline_mode = #tpu.pipeline_mode<synchronous>, transform_indices = @transform_2, window_bounds = array<i64: 8, 1>}, {pipeline_mode = #tpu.pipeline_mode<synchronous>, transform_indices = @transform_3, window_bounds = array<i64: 1, 1>}, {pipeline_mode = #tpu.pipeline_mode<synchronous>, transform_indices = @transform_4, window_bounds = array<i64: 1, 96>}, {transform_indices = @transform_5, window_bounds = array<i64: 1, 1, 8, 156>}]} {
    %c2_i32 = arith.constant 2 : i32
    %0 = arith.subi %arg1, %c2_i32 : i32
    %c2_i32_0 = arith.constant 2 : i32
    %1 = arith.cmpi sge, %arg1, %c2_i32_0 : i32
    %c10_i32 = arith.constant 10 : i32
    %2 = arith.cmpi slt, %arg1, %c10_i32 : i32
    %3 = arith.andi %1, %2 : i1
    %true = arith.constant true
    %4 = arith.xori %3, %true : i1
    %5 = arith.extui %4 : i1 to i32
    %c0_i32 = arith.constant 0 : i32
    %6 = arith.cmpi ne, %5, %c0_i32 : i32
    scf.if %6 {
      %cst = arith.constant 0.000000e+00 : f32
      %9 = vector.broadcast %cst : f32 to vector<8x156xf32>
      %c0 = arith.constant 0 : index
      %c0_2 = arith.constant 0 : index
      %c0_3 = arith.constant 0 : index
      %c0_4 = arith.constant 0 : index
      %10 = vector.load %arg7[%c0, %c0_2, %c0_3, %c0_4] : memref<1x1x8x156xf32, #tpu.memory_space<vmem>>, vector<1x1x8x156xf32>
      %11 = vector.shape_cast %10 : vector<1x1x8x156xf32> to vector<8x156xf32>
      %12 = vector.shape_cast %9 : vector<8x156xf32> to vector<1x1x8x156xf32>
      tpu.vector_store %arg7[%c0, %c0_2, %c0_3, %c0_4], %12 {strides = array<i32>} : memref<1x1x8x156xf32, #tpu.memory_space<vmem>>, vector<1x1x8x156xf32>,
    } else {
    }
    %7 = arith.extui %3 : i1 to i32
    %c0_i32_1 = arith.constant 0 : i32
    %8 = arith.cmpi ne, %7, %c0_i32_1 : i32
    scf.if %8 {
      %cst = arith.constant 0.000000e+00 : f32
      %9 = vector.broadcast %cst : f32 to vector<8x26xf32>
      %c0 = arith.constant 0 : index
      %c0_2 = arith.constant 0 : index
      %c0_3 = arith.constant 0 : index
      %c0_4 = arith.constant 0 : index
      %10 = vector.load %arg7[%c0, %c0_2, %c0_3, %c0_4] : memref<1x1x8x156xf32, #tpu.memory_space<vmem>>, vector<1x1x8x26xf32>
      %11 = vector.shape_cast %10 : vector<1x1x8x26xf32> to vector<8x26xf32>
      %12 = vector.shape_cast %9 : vector<8x26xf32> to vector<1x1x8x26xf32>
      tpu.vector_store %arg7[%c0, %c0_2, %c0_3, %c0_4], %12 {strides = array<i32>} : memref<1x1x8x156xf32, #tpu.memory_space<vmem>>, vector<1x1x8x26xf32>,
      %cst_5 = arith.constant 0.000000e+00 : f32
      %13 = vector.broadcast %cst_5 : f32 to vector<8x34xf32>
      %c0_6 = arith.constant 0 : index
      %c0_7 = arith.constant 0 : index
      %c0_8 = arith.constant 0 : index
      %c122 = arith.constant 122 : index
      %14 = vector.load %arg7[%c0_6, %c0_7, %c0_8, %c122] : memref<1x1x8x156xf32, #tpu.memory_space<vmem>>, vector<1x1x8x34xf32>
      %15 = vector.shape_cast %14 : vector<1x1x8x34xf32> to vector<8x34xf32>
      %16 = vector.shape_cast %13 : vector<8x34xf32> to vector<1x1x8x34xf32>
      tpu.vector_store %arg7[%c0_6, %c0_7, %c0_8, %c122], %16 {strides = array<i32>} : memref<1x1x8x156xf32, #tpu.memory_space<vmem>>, vector<1x1x8x34xf32>,
      %c0_9 = arith.constant 0 : index
      %c0_10 = arith.constant 0 : index
      %17 = vector.load %arg4[%c0_9, %c0_10] : memref<8x1xf32, #tpu.memory_space<vmem>>, vector<8x1xf32>
      %c0_11 = arith.constant 0 : index
      %c0_12 = arith.constant 0 : index
      %18 = vector.load %arg5[%c0_11, %c0_12] : memref<1x1xf32, #tpu.memory_space<vmem>>, vector<1x1xf32>
      %cst_13 = arith.constant 0.000000e+00 : f32
      %19 = vector.broadcast %cst_13 : f32 to vector<8x96xf32>
      %c0_i32_14 = arith.constant 0 : i32
      %c5_i32 = arith.constant 5 : i32
      %20 = arith.addi %c0_i32_14, %c5_i32 : i32
      %c1_i32 = arith.constant 1 : i32
      %21 = scf.for %arg8 = %c0_i32_14 to %20 step %c1_i32 iter_args(%arg9 = %19) -> (vector<8x96xf32>)  : i32 {
        %35 = arith.addi %0, %arg8 : i32
        %c0_22 = arith.constant 0 : index
        %36 = arith.index_cast %35 : i32 to index
        %c0_23 = arith.constant 0 : index
        %c0_24 = arith.constant 0 : index
        %37 = vector.load %arg2[%c0_22, %36, %c0_23, %c0_24] : memref<1x12x8x156xf32, #tpu.memory_space<vmem>>, vector<1x1x8x96xf32>
        %38 = vector.shape_cast %37 : vector<1x1x8x96xf32> to vector<8x96xf32>
        %39 = arith.addi %0, %arg8 : i32
        %c0_25 = arith.constant 0 : index
        %40 = arith.index_cast %39 : i32 to index
        %c0_26 = arith.constant 0 : index
        %c1 = arith.constant 1 : index
        %41 = vector.load %arg2[%c0_25, %40, %c0_26, %c1] : memref<1x12x8x156xf32, #tpu.memory_space<vmem>>, vector<1x1x8x96xf32>
        %42 = vector.shape_cast %41 : vector<1x1x8x96xf32> to vector<8x96xf32>
        %43 = arith.addi %0, %arg8 : i32
        %c0_27 = arith.constant 0 : index
        %44 = arith.index_cast %43 : i32 to index
        %c0_28 = arith.constant 0 : index
        %c2 = arith.constant 2 : index
        %45 = vector.load %arg2[%c0_27, %44, %c0_28, %c2] : memref<1x12x8x156xf32, #tpu.memory_space<vmem>>, vector<1x1x8x96xf32>
        %46 = vector.shape_cast %45 : vector<1x1x8x96xf32> to vector<8x96xf32>
        %47 = arith.addi %0, %arg8 : i32
        %c0_29 = arith.constant 0 : index
        %48 = arith.index_cast %47 : i32 to index
        %c0_30 = arith.constant 0 : index
        %c3 = arith.constant 3 : index
        %49 = vector.load %arg2[%c0_29, %48, %c0_30, %c3] : memref<1x12x8x156xf32, #tpu.memory_space<vmem>>, vector<1x1x8x96xf32>
        %50 = vector.shape_cast %49 : vector<1x1x8x96xf32> to vector<8x96xf32>
        %51 = arith.addi %0, %arg8 : i32
        %c0_31 = arith.constant 0 : index
        %52 = arith.index_cast %51 : i32 to index
        %c0_32 = arith.constant 0 : index
        %c4 = arith.constant 4 : index
        %53 = vector.load %arg2[%c0_31, %52, %c0_32, %c4] : memref<1x12x8x156xf32, #tpu.memory_space<vmem>>, vector<1x1x8x96xf32>
        %54 = vector.shape_cast %53 : vector<1x1x8x96xf32> to vector<8x96xf32>
        %55 = tpu.concatenate %38, %42, %46, %50, %54 in 0 : vector<8x96xf32>, vector<8x96xf32>, vector<8x96xf32>, vector<8x96xf32>, vector<8x96xf32> -> vector<40x96xf32>
        %c5_i32_33 = arith.constant 5 : i32
        %56 = arith.muli %arg8, %c5_i32_33 : i32
        %c0_i32_34 = arith.constant 0 : i32
        %57 = arith.addi %56, %c0_i32_34 : i32
        %58 = arith.index_cast %57 : i32 to index
        %c0_35 = arith.constant 0 : index
        %c0_36 = arith.constant 0 : index
        %59 = vector.load %arg3[%58, %c0_35, %c0_36] : memref<25x8x40xf32, #tpu.memory_space<vmem>>, vector<1x8x40xf32>
        %60 = vector.shape_cast %59 : vector<1x8x40xf32> to vector<8x40xf32>
        %cst_37 = arith.constant dense<0.000000e+00> : vector<8x96xf32>
        %61 = tpu.matmul %60, %55, %cst_37 {dimension_numbers = #tpu.dot_dimension_numbers<[1], [0], [0], [1], [0, 0, 1, 1], [], []>} : vector<8x40xf32>, vector<40x96xf32>, vector<8x96xf32> -> vector<8x96xf32>
        %62 = arith.addf %arg9, %61 : vector<8x96xf32>
        %63 = arith.addi %0, %arg8 : i32
        %c0_38 = arith.constant 0 : index
        %64 = arith.index_cast %63 : i32 to index
        %c0_39 = arith.constant 0 : index
        %c12 = arith.constant 12 : index
        %65 = vector.load %arg2[%c0_38, %64, %c0_39, %c12] : memref<1x12x8x156xf32, #tpu.memory_space<vmem>>, vector<1x1x8x96xf32>
        %66 = vector.shape_cast %65 : vector<1x1x8x96xf32> to vector<8x96xf32>
        %67 = arith.addi %0, %arg8 : i32
        %c0_40 = arith.constant 0 : index
        %68 = arith.index_cast %67 : i32 to index
        %c0_41 = arith.constant 0 : index
        %c13 = arith.constant 13 : index
        %69 = vector.load %arg2[%c0_40, %68, %c0_41, %c13] : memref<1x12x8x156xf32, #tpu.memory_space<vmem>>, vector<1x1x8x96xf32>
        %70 = vector.shape_cast %69 : vector<1x1x8x96xf32> to vector<8x96xf32>
        %71 = arith.addi %0, %arg8 : i32
        %c0_42 = arith.constant 0 : index
        %72 = arith.index_cast %71 : i32 to index
        %c0_43 = arith.constant 0 : index
        %c14 = arith.constant 14 : index
        %73 = vector.load %arg2[%c0_42, %72, %c0_43, %c14] : memref<1x12x8x156xf32, #tpu.memory_space<vmem>>, vector<1x1x8x96xf32>
        %74 = vector.shape_cast %73 : vector<1x1x8x96xf32> to vector<8x96xf32>
        %75 = arith.addi %0, %arg8 : i32
        %c0_44 = arith.constant 0 : index
        %76 = arith.index_cast %75 : i32 to index
        %c0_45 = arith.constant 0 : index
        %c15 = arith.constant 15 : index
        %77 = vector.load %arg2[%c0_44, %76, %c0_45, %c15] : memref<1x12x8x156xf32, #tpu.memory_space<vmem>>, vector<1x1x8x96xf32>
        %78 = vector.shape_cast %77 : vector<1x1x8x96xf32> to vector<8x96xf32>
        %79 = arith.addi %0, %arg8 : i32
        %c0_46 = arith.constant 0 : index
        %80 = arith.index_cast %79 : i32 to index
        %c0_47 = arith.constant 0 : index
        %c16 = arith.constant 16 : index
        %81 = vector.load %arg2[%c0_46, %80, %c0_47, %c16] : memref<1x12x8x156xf32, #tpu.memory_space<vmem>>, vector<1x1x8x96xf32>
        %82 = vector.shape_cast %81 : vector<1x1x8x96xf32> to vector<8x96xf32>
        %83 = tpu.concatenate %66, %70, %74, %78, %82 in 0 : vector<8x96xf32>, vector<8x96xf32>, vector<8x96xf32>, vector<8x96xf32>, vector<8x96xf32> -> vector<40x96xf32>
        %c5_i32_48 = arith.constant 5 : i32
        %84 = arith.muli %arg8, %c5_i32_48 : i32
        %c1_i32_49 = arith.constant 1 : i32
        %85 = arith.addi %84, %c1_i32_49 : i32
        %86 = arith.index_cast %85 : i32 to index
        %c0_50 = arith.constant 0 : index
        %c0_51 = arith.constant 0 : index
        %87 = vector.load %arg3[%86, %c0_50, %c0_51] : memref<25x8x40xf32, #tpu.memory_space<vmem>>, vector<1x8x40xf32>
        %88 = vector.shape_cast %87 : vector<1x8x40xf32> to vector<8x40xf32>
        %cst_52 = arith.constant dense<0.000000e+00> : vector<8x96xf32>
        %89 = tpu.matmul %88, %83, %cst_52 {dimension_numbers = #tpu.dot_dimension_numbers<[1], [0], [0], [1], [0, 0, 1, 1], [], []>} : vector<8x40xf32>, vector<40x96xf32>, vector<8x96xf32> -> vector<8x96xf32>
        %90 = arith.addf %62, %89 : vector<8x96xf32>
        %91 = arith.addi %0, %arg8 : i32
        %c0_53 = arith.constant 0 : index
        %92 = arith.index_cast %91 : i32 to index
        %c0_54 = arith.constant 0 : index
        %c24 = arith.constant 24 : index
        %93 = vector.load %arg2[%c0_53, %92, %c0_54, %c24] : memref<1x12x8x156xf32, #tpu.memory_space<vmem>>, vector<1x1x8x96xf32>
        %94 = vector.shape_cast %93 : vector<1x1x8x96xf32> to vector<8x96xf32>
        %95 = arith.addi %0, %arg8 : i32
        %c0_55 = arith.constant 0 : index
        %96 = arith.index_cast %95 : i32 to index
        %c0_56 = arith.constant 0 : index
        %c25 = arith.constant 25 : index
        %97 = vector.load %arg2[%c0_55, %96, %c0_56, %c25] : memref<1x12x8x156xf32, #tpu.memory_space<vmem>>, vector<1x1x8x96xf32>
        %98 = vector.shape_cast %97 : vector<1x1x8x96xf32> to vector<8x96xf32>
        %99 = arith.addi %0, %arg8 : i32
        %c0_57 = arith.constant 0 : index
        %100 = arith.index_cast %99 : i32 to index
        %c0_58 = arith.constant 0 : index
        %c26_59 = arith.constant 26 : index
        %101 = vector.load %arg2[%c0_57, %100, %c0_58, %c26_59] : memref<1x12x8x156xf32, #tpu.memory_space<vmem>>, vector<1x1x8x96xf32>
        %102 = vector.shape_cast %101 : vector<1x1x8x96xf32> to vector<8x96xf32>
        %103 = arith.addi %0, %arg8 : i32
        %c0_60 = arith.constant 0 : index
        %104 = arith.index_cast %103 : i32 to index
        %c0_61 = arith.constant 0 : index
        %c27 = arith.constant 27 : index
        %105 = vector.load %arg2[%c0_60, %104, %c0_61, %c27] : memref<1x12x8x156xf32, #tpu.memory_space<vmem>>, vector<1x1x8x96xf32>
        %106 = vector.shape_cast %105 : vector<1x1x8x96xf32> to vector<8x96xf32>
        %107 = arith.addi %0, %arg8 : i32
        %c0_62 = arith.constant 0 : index
        %108 = arith.index_cast %107 : i32 to index
        %c0_63 = arith.constant 0 : index
        %c28 = arith.constant 28 : index
        %109 = vector.load %arg2[%c0_62, %108, %c0_63, %c28] : memref<1x12x8x156xf32, #tpu.memory_space<vmem>>, vector<1x1x8x96xf32>
        %110 = vector.shape_cast %109 : vector<1x1x8x96xf32> to vector<8x96xf32>
        %111 = tpu.concatenate %94, %98, %102, %106, %110 in 0 : vector<8x96xf32>, vector<8x96xf32>, vector<8x96xf32>, vector<8x96xf32>, vector<8x96xf32> -> vector<40x96xf32>
        %c5_i32_64 = arith.constant 5 : i32
        %112 = arith.muli %arg8, %c5_i32_64 : i32
        %c2_i32_65 = arith.constant 2 : i32
        %113 = arith.addi %112, %c2_i32_65 : i32
        %114 = arith.index_cast %113 : i32 to index
        %c0_66 = arith.constant 0 : index
        %c0_67 = arith.constant 0 : index
        %115 = vector.load %arg3[%114, %c0_66, %c0_67] : memref<25x8x40xf32, #tpu.memory_space<vmem>>, vector<1x8x40xf32>
        %116 = vector.shape_cast %115 : vector<1x8x40xf32> to vector<8x40xf32>
        %cst_68 = arith.constant dense<0.000000e+00> : vector<8x96xf32>
        %117 = tpu.matmul %116, %111, %cst_68 {dimension_numbers = #tpu.dot_dimension_numbers<[1], [0], [0], [1], [0, 0, 1, 1], [], []>} : vector<8x40xf32>, vector<40x96xf32>, vector<8x96xf32> -> vector<8x96xf32>
        %118 = arith.addf %90, %117 : vector<8x96xf32>
        %119 = arith.addi %0, %arg8 : i32
        %c0_69 = arith.constant 0 : index
        %120 = arith.index_cast %119 : i32 to index
        %c0_70 = arith.constant 0 : index
        %c36 = arith.constant 36 : index
        %121 = vector.load %arg2[%c0_69, %120, %c0_70, %c36] : memref<1x12x8x156xf32, #tpu.memory_space<vmem>>, vector<1x1x8x96xf32>
        %122 = vector.shape_cast %121 : vector<1x1x8x96xf32> to vector<8x96xf32>
        %123 = arith.addi %0, %arg8 : i32
        %c0_71 = arith.constant 0 : index
        %124 = arith.index_cast %123 : i32 to index
        %c0_72 = arith.constant 0 : index
        %c37 = arith.constant 37 : index
        %125 = vector.load %arg2[%c0_71, %124, %c0_72, %c37] : memref<1x12x8x156xf32, #tpu.memory_space<vmem>>, vector<1x1x8x96xf32>
        %126 = vector.shape_cast %125 : vector<1x1x8x96xf32> to vector<8x96xf32>
        %127 = arith.addi %0, %arg8 : i32
        %c0_73 = arith.constant 0 : index
        %128 = arith.index_cast %127 : i32 to index
        %c0_74 = arith.constant 0 : index
        %c38 = arith.constant 38 : index
        %129 = vector.load %arg2[%c0_73, %128, %c0_74, %c38] : memref<1x12x8x156xf32, #tpu.memory_space<vmem>>, vector<1x1x8x96xf32>
        %130 = vector.shape_cast %129 : vector<1x1x8x96xf32> to vector<8x96xf32>
        %131 = arith.addi %0, %arg8 : i32
        %c0_75 = arith.constant 0 : index
        %132 = arith.index_cast %131 : i32 to index
        %c0_76 = arith.constant 0 : index
        %c39 = arith.constant 39 : index
        %133 = vector.load %arg2[%c0_75, %132, %c0_76, %c39] : memref<1x12x8x156xf32, #tpu.memory_space<vmem>>, vector<1x1x8x96xf32>
        %134 = vector.shape_cast %133 : vector<1x1x8x96xf32> to vector<8x96xf32>
        %135 = arith.addi %0, %arg8 : i32
        %c0_77 = arith.constant 0 : index
        %136 = arith.index_cast %135 : i32 to index
        %c0_78 = arith.constant 0 : index
        %c40 = arith.constant 40 : index
        %137 = vector.load %arg2[%c0_77, %136, %c0_78, %c40] : memref<1x12x8x156xf32, #tpu.memory_space<vmem>>, vector<1x1x8x96xf32>
        %138 = vector.shape_cast %137 : vector<1x1x8x96xf32> to vector<8x96xf32>
        %139 = tpu.concatenate %122, %126, %130, %134, %138 in 0 : vector<8x96xf32>, vector<8x96xf32>, vector<8x96xf32>, vector<8x96xf32>, vector<8x96xf32> -> vector<40x96xf32>
        %c5_i32_79 = arith.constant 5 : i32
        %140 = arith.muli %arg8, %c5_i32_79 : i32
        %c3_i32 = arith.constant 3 : i32
        %141 = arith.addi %140, %c3_i32 : i32
        %142 = arith.index_cast %141 : i32 to index
        %c0_80 = arith.constant 0 : index
        %c0_81 = arith.constant 0 : index
        %143 = vector.load %arg3[%142, %c0_80, %c0_81] : memref<25x8x40xf32, #tpu.memory_space<vmem>>, vector<1x8x40xf32>
        %144 = vector.shape_cast %143 : vector<1x8x40xf32> to vector<8x40xf32>
        %cst_82 = arith.constant dense<0.000000e+00> : vector<8x96xf32>
        %145 = tpu.matmul %144, %139, %cst_82 {dimension_numbers = #tpu.dot_dimension_numbers<[1], [0], [0], [1], [0, 0, 1, 1], [], []>} : vector<8x40xf32>, vector<40x96xf32>, vector<8x96xf32> -> vector<8x96xf32>
        %146 = arith.addf %118, %145 : vector<8x96xf32>
        %147 = arith.addi %0, %arg8 : i32
        %c0_83 = arith.constant 0 : index
        %148 = arith.index_cast %147 : i32 to index
        %c0_84 = arith.constant 0 : index
        %c48 = arith.constant 48 : index
        %149 = vector.load %arg2[%c0_83, %148, %c0_84, %c48] : memref<1x12x8x156xf32, #tpu.memory_space<vmem>>, vector<1x1x8x96xf32>
        %150 = vector.shape_cast %149 : vector<1x1x8x96xf32> to vector<8x96xf32>
        %151 = arith.addi %0, %arg8 : i32
        %c0_85 = arith.constant 0 : index
        %152 = arith.index_cast %151 : i32 to index
        %c0_86 = arith.constant 0 : index
        %c49 = arith.constant 49 : index
        %153 = vector.load %arg2[%c0_85, %152, %c0_86, %c49] : memref<1x12x8x156xf32, #tpu.memory_space<vmem>>, vector<1x1x8x96xf32>
        %154 = vector.shape_cast %153 : vector<1x1x8x96xf32> to vector<8x96xf32>
        %155 = arith.addi %0, %arg8 : i32
        %c0_87 = arith.constant 0 : index
        %156 = arith.index_cast %155 : i32 to index
        %c0_88 = arith.constant 0 : index
        %c50 = arith.constant 50 : index
        %157 = vector.load %arg2[%c0_87, %156, %c0_88, %c50] : memref<1x12x8x156xf32, #tpu.memory_space<vmem>>, vector<1x1x8x96xf32>
        %158 = vector.shape_cast %157 : vector<1x1x8x96xf32> to vector<8x96xf32>
        %159 = arith.addi %0, %arg8 : i32
        %c0_89 = arith.constant 0 : index
        %160 = arith.index_cast %159 : i32 to index
        %c0_90 = arith.constant 0 : index
        %c51 = arith.constant 51 : index
        %161 = vector.load %arg2[%c0_89, %160, %c0_90, %c51] : memref<1x12x8x156xf32, #tpu.memory_space<vmem>>, vector<1x1x8x96xf32>
        %162 = vector.shape_cast %161 : vector<1x1x8x96xf32> to vector<8x96xf32>
        %163 = arith.addi %0, %arg8 : i32
        %c0_91 = arith.constant 0 : index
        %164 = arith.index_cast %163 : i32 to index
        %c0_92 = arith.constant 0 : index
        %c52 = arith.constant 52 : index
        %165 = vector.load %arg2[%c0_91, %164, %c0_92, %c52] : memref<1x12x8x156xf32, #tpu.memory_space<vmem>>, vector<1x1x8x96xf32>
        %166 = vector.shape_cast %165 : vector<1x1x8x96xf32> to vector<8x96xf32>
        %167 = tpu.concatenate %150, %154, %158, %162, %166 in 0 : vector<8x96xf32>, vector<8x96xf32>, vector<8x96xf32>, vector<8x96xf32>, vector<8x96xf32> -> vector<40x96xf32>
        %c5_i32_93 = arith.constant 5 : i32
        %168 = arith.muli %arg8, %c5_i32_93 : i32
        %c4_i32 = arith.constant 4 : i32
        %169 = arith.addi %168, %c4_i32 : i32
        %170 = arith.index_cast %169 : i32 to index
        %c0_94 = arith.constant 0 : index
        %c0_95 = arith.constant 0 : index
        %171 = vector.load %arg3[%170, %c0_94, %c0_95] : memref<25x8x40xf32, #tpu.memory_space<vmem>>, vector<1x8x40xf32>
        %172 = vector.shape_cast %171 : vector<1x8x40xf32> to vector<8x40xf32>
        %cst_96 = arith.constant dense<0.000000e+00> : vector<8x96xf32>
        %173 = tpu.matmul %172, %167, %cst_96 {dimension_numbers = #tpu.dot_dimension_numbers<[1], [0], [0], [1], [0, 0, 1, 1], [], []>} : vector<8x40xf32>, vector<40x96xf32>, vector<8x96xf32> -> vector<8x96xf32>
        %174 = arith.addf %146, %173 : vector<8x96xf32>
        scf.yield %174 : vector<8x96xf32>
      }
      %c5_i32_15 = arith.constant 5 : i32
      %22 = vector.broadcast %17 : vector<8x1xf32> to vector<8x96xf32>
      %23 = arith.addf %21, %22 : vector<8x96xf32>
      %cst_16 = arith.constant 0.000000e+00 : f32
      %24 = vector.broadcast %cst_16 : f32 to vector<8x96xf32>
      %25 = arith.cmpf oge, %23, %24 : vector<8x96xf32>
      %26 = vector.broadcast %18 : vector<1x1xf32> to vector<8x96xf32>
      %27 = arith.mulf %26, %23 : vector<8x96xf32>
      %28 = arith.select %25, %23, %27 : vector<8x96xi1>, vector<8x96xf32>
      %c0_17 = arith.constant 0 : index
      %c0_18 = arith.constant 0 : index
      %29 = vector.load %arg6[%c0_17, %c0_18] : memref<1x96xf32, #tpu.memory_space<vmem>>, vector<1x96xf32>
      %30 = vector.broadcast %29 : vector<1x96xf32> to vector<8x96xf32>
      %31 = arith.mulf %28, %30 : vector<8x96xf32>
      %c0_19 = arith.constant 0 : index
      %c0_20 = arith.constant 0 : index
      %c0_21 = arith.constant 0 : index
      %c26 = arith.constant 26 : index
      %32 = vector.load %arg7[%c0_19, %c0_20, %c0_21, %c26] : memref<1x1x8x156xf32, #tpu.memory_space<vmem>>, vector<1x1x8x96xf32>
      %33 = vector.shape_cast %32 : vector<1x1x8x96xf32> to vector<8x96xf32>
      %34 = vector.shape_cast %31 : vector<8x96xf32> to vector<1x1x8x96xf32>
      tpu.vector_store %arg7[%c0_19, %c0_20, %c0_21, %c26], %34 {strides = array<i32>} : memref<1x1x8x156xf32, #tpu.memory_space<vmem>>, vector<1x1x8x96xf32>,
    } else {
    }
    return
  }
  func.func @transform_0(%arg0: i32, %arg1: i32) -> (i32, i32, i32, i32) {
    %c0_i32 = arith.constant 0 : i32
    %c0_i32_0 = arith.constant 0 : i32
    %c0_i32_1 = arith.constant 0 : i32
    %c0_i32_2 = arith.constant 0 : i32
    return %arg0, %c0_i32, %c0_i32_0, %c0_i32_1 : i32, i32, i32, i32
  }
  func.func @transform_1(%arg0: i32, %arg1: i32) -> (i32, i32, i32) {
    %c0_i32 = arith.constant 0 : i32
    %c0_i32_0 = arith.constant 0 : i32
    %c0_i32_1 = arith.constant 0 : i32
    %c0_i32_2 = arith.constant 0 : i32
    return %c0_i32, %c0_i32_0, %c0_i32_1 : i32, i32, i32
  }
  func.func @transform_2(%arg0: i32, %arg1: i32) -> (i32, i32) {
    %c0_i32 = arith.constant 0 : i32
    %c0_i32_0 = arith.constant 0 : i32
    %c0_i32_1 = arith.constant 0 : i32
    return %c0_i32, %c0_i32_0 : i32, i32
  }
  func.func @transform_3(%arg0: i32, %arg1: i32) -> (i32, i32) {
    %c0_i32 = arith.constant 0 : i32
    %c0_i32_0 = arith.constant 0 : i32
    %c0_i32_1 = arith.constant 0 : i32
    return %c0_i32, %c0_i32_0 : i32, i32
  }
  func.func @transform_4(%arg0: i32, %arg1: i32) -> (i32, i32) {
    %c0_i32 = arith.constant 0 : i32
    %c0_i32_0 = arith.constant 0 : i32
    %c0_i32_1 = arith.constant 0 : i32
    return %c0_i32, %c0_i32_0 : i32, i32
  }
  func.func @transform_5(%arg0: i32, %arg1: i32) -> (i32, i32, i32, i32) {
    %c0_i32 = arith.constant 0 : i32
    %c0_i32_0 = arith.constant 0 : i32
    %c0_i32_1 = arith.constant 0 : i32
    return %arg0, %arg1, %c0_i32, %c0_i32_0 : i32, i32, i32, i32
  }
}

module attributes {stable_mosaic.version = 11 : i64} {
  func.func @_conv5_kernel(%arg0: i32, %arg1: i32, %arg2: memref<1x12x8x156xf32, #tpu.memory_space<vmem>>, %arg3: memref<25x8x40xf32, #tpu.memory_space<vmem>>, %arg4: memref<8x1xf32, #tpu.memory_space<vmem>>, %arg5: memref<1x1xf32, #tpu.memory_space<vmem>>, %arg6: memref<1x96xf32, #tpu.memory_space<vmem>>, %arg7: memref<1x1x8x156xf32, #tpu.memory_space<vmem>>, %arg8: memref<1x1x8x156xf32, #tpu.memory_space<vmem>>) attributes {dimension_semantics = [#tpu.dimension_semantics<parallel>, #tpu.dimension_semantics<parallel>], iteration_bounds = array<i64: 2, 12>, scalar_prefetch = 0 : i64, scratch_operands = 0 : i64, tpu.core_type = #tpu.core_type<tc>, window_params = [{transform_indices = @transform_0, window_bounds = array<i64: 1, 12, 8, 156>}, {pipeline_mode = #tpu.pipeline_mode<synchronous>, transform_indices = @transform_1, window_bounds = array<i64: 25, 8, 40>}, {pipeline_mode = #tpu.pipeline_mode<synchronous>, transform_indices = @transform_2, window_bounds = array<i64: 8, 1>}, {pipeline_mode = #tpu.pipeline_mode<synchronous>, transform_indices = @transform_3, window_bounds = array<i64: 1, 1>}, {pipeline_mode = #tpu.pipeline_mode<synchronous>, transform_indices = @transform_4, window_bounds = array<i64: 1, 96>}, {transform_indices = @transform_5, window_bounds = array<i64: 1, 1, 8, 156>}, {transform_indices = @transform_6, window_bounds = array<i64: 1, 1, 8, 156>}]} {
    %c2_i32 = arith.constant 2 : i32
    %0 = arith.subi %arg1, %c2_i32 : i32
    %c2_i32_0 = arith.constant 2 : i32
    %1 = arith.cmpi sge, %arg1, %c2_i32_0 : i32
    %c10_i32 = arith.constant 10 : i32
    %2 = arith.cmpi slt, %arg1, %c10_i32 : i32
    %3 = arith.andi %1, %2 : i1
    %true = arith.constant true
    %4 = arith.xori %3, %true : i1
    %5 = arith.extui %4 : i1 to i32
    %c0_i32 = arith.constant 0 : i32
    %6 = arith.cmpi ne, %5, %c0_i32 : i32
    scf.if %6 {
      %cst = arith.constant 0.000000e+00 : f32
      %9 = vector.broadcast %cst : f32 to vector<8x156xf32>
      %c0 = arith.constant 0 : index
      %c0_2 = arith.constant 0 : index
      %c0_3 = arith.constant 0 : index
      %c0_4 = arith.constant 0 : index
      %10 = vector.load %arg8[%c0, %c0_2, %c0_3, %c0_4] : memref<1x1x8x156xf32, #tpu.memory_space<vmem>>, vector<1x1x8x156xf32>
      %11 = vector.shape_cast %10 : vector<1x1x8x156xf32> to vector<8x156xf32>
      %12 = vector.shape_cast %9 : vector<8x156xf32> to vector<1x1x8x156xf32>
      tpu.vector_store %arg8[%c0, %c0_2, %c0_3, %c0_4], %12 {strides = array<i32>} : memref<1x1x8x156xf32, #tpu.memory_space<vmem>>, vector<1x1x8x156xf32>,
    } else {
    }
    %7 = arith.extui %3 : i1 to i32
    %c0_i32_1 = arith.constant 0 : i32
    %8 = arith.cmpi ne, %7, %c0_i32_1 : i32
    scf.if %8 {
      %cst = arith.constant 0.000000e+00 : f32
      %9 = vector.broadcast %cst : f32 to vector<8x26xf32>
      %c0 = arith.constant 0 : index
      %c0_2 = arith.constant 0 : index
      %c0_3 = arith.constant 0 : index
      %c0_4 = arith.constant 0 : index
      %10 = vector.load %arg8[%c0, %c0_2, %c0_3, %c0_4] : memref<1x1x8x156xf32, #tpu.memory_space<vmem>>, vector<1x1x8x26xf32>
      %11 = vector.shape_cast %10 : vector<1x1x8x26xf32> to vector<8x26xf32>
      %12 = vector.shape_cast %9 : vector<8x26xf32> to vector<1x1x8x26xf32>
      tpu.vector_store %arg8[%c0, %c0_2, %c0_3, %c0_4], %12 {strides = array<i32>} : memref<1x1x8x156xf32, #tpu.memory_space<vmem>>, vector<1x1x8x26xf32>,
      %cst_5 = arith.constant 0.000000e+00 : f32
      %13 = vector.broadcast %cst_5 : f32 to vector<8x34xf32>
      %c0_6 = arith.constant 0 : index
      %c0_7 = arith.constant 0 : index
      %c0_8 = arith.constant 0 : index
      %c122 = arith.constant 122 : index
      %14 = vector.load %arg8[%c0_6, %c0_7, %c0_8, %c122] : memref<1x1x8x156xf32, #tpu.memory_space<vmem>>, vector<1x1x8x34xf32>
      %15 = vector.shape_cast %14 : vector<1x1x8x34xf32> to vector<8x34xf32>
      %16 = vector.shape_cast %13 : vector<8x34xf32> to vector<1x1x8x34xf32>
      tpu.vector_store %arg8[%c0_6, %c0_7, %c0_8, %c122], %16 {strides = array<i32>} : memref<1x1x8x156xf32, #tpu.memory_space<vmem>>, vector<1x1x8x34xf32>,
      %c0_9 = arith.constant 0 : index
      %c0_10 = arith.constant 0 : index
      %17 = vector.load %arg4[%c0_9, %c0_10] : memref<8x1xf32, #tpu.memory_space<vmem>>, vector<8x1xf32>
      %c0_11 = arith.constant 0 : index
      %c0_12 = arith.constant 0 : index
      %18 = vector.load %arg5[%c0_11, %c0_12] : memref<1x1xf32, #tpu.memory_space<vmem>>, vector<1x1xf32>
      %cst_13 = arith.constant 0.000000e+00 : f32
      %19 = vector.broadcast %cst_13 : f32 to vector<8x96xf32>
      %c0_i32_14 = arith.constant 0 : i32
      %c5_i32 = arith.constant 5 : i32
      %20 = arith.addi %c0_i32_14, %c5_i32 : i32
      %c1_i32 = arith.constant 1 : i32
      %21 = scf.for %arg9 = %c0_i32_14 to %20 step %c1_i32 iter_args(%arg10 = %19) -> (vector<8x96xf32>)  : i32 {
        %38 = arith.addi %0, %arg9 : i32
        %c0_26 = arith.constant 0 : index
        %39 = arith.index_cast %38 : i32 to index
        %c0_27 = arith.constant 0 : index
        %c0_28 = arith.constant 0 : index
        %40 = vector.load %arg2[%c0_26, %39, %c0_27, %c0_28] : memref<1x12x8x156xf32, #tpu.memory_space<vmem>>, vector<1x1x8x96xf32>
        %41 = vector.shape_cast %40 : vector<1x1x8x96xf32> to vector<8x96xf32>
        %42 = arith.addi %0, %arg9 : i32
        %c0_29 = arith.constant 0 : index
        %43 = arith.index_cast %42 : i32 to index
        %c0_30 = arith.constant 0 : index
        %c1 = arith.constant 1 : index
        %44 = vector.load %arg2[%c0_29, %43, %c0_30, %c1] : memref<1x12x8x156xf32, #tpu.memory_space<vmem>>, vector<1x1x8x96xf32>
        %45 = vector.shape_cast %44 : vector<1x1x8x96xf32> to vector<8x96xf32>
        %46 = arith.addi %0, %arg9 : i32
        %c0_31 = arith.constant 0 : index
        %47 = arith.index_cast %46 : i32 to index
        %c0_32 = arith.constant 0 : index
        %c2 = arith.constant 2 : index
        %48 = vector.load %arg2[%c0_31, %47, %c0_32, %c2] : memref<1x12x8x156xf32, #tpu.memory_space<vmem>>, vector<1x1x8x96xf32>
        %49 = vector.shape_cast %48 : vector<1x1x8x96xf32> to vector<8x96xf32>
        %50 = arith.addi %0, %arg9 : i32
        %c0_33 = arith.constant 0 : index
        %51 = arith.index_cast %50 : i32 to index
        %c0_34 = arith.constant 0 : index
        %c3 = arith.constant 3 : index
        %52 = vector.load %arg2[%c0_33, %51, %c0_34, %c3] : memref<1x12x8x156xf32, #tpu.memory_space<vmem>>, vector<1x1x8x96xf32>
        %53 = vector.shape_cast %52 : vector<1x1x8x96xf32> to vector<8x96xf32>
        %54 = arith.addi %0, %arg9 : i32
        %c0_35 = arith.constant 0 : index
        %55 = arith.index_cast %54 : i32 to index
        %c0_36 = arith.constant 0 : index
        %c4 = arith.constant 4 : index
        %56 = vector.load %arg2[%c0_35, %55, %c0_36, %c4] : memref<1x12x8x156xf32, #tpu.memory_space<vmem>>, vector<1x1x8x96xf32>
        %57 = vector.shape_cast %56 : vector<1x1x8x96xf32> to vector<8x96xf32>
        %58 = tpu.concatenate %41, %45, %49, %53, %57 in 0 : vector<8x96xf32>, vector<8x96xf32>, vector<8x96xf32>, vector<8x96xf32>, vector<8x96xf32> -> vector<40x96xf32>
        %c5_i32_37 = arith.constant 5 : i32
        %59 = arith.muli %arg9, %c5_i32_37 : i32
        %c0_i32_38 = arith.constant 0 : i32
        %60 = arith.addi %59, %c0_i32_38 : i32
        %61 = arith.index_cast %60 : i32 to index
        %c0_39 = arith.constant 0 : index
        %c0_40 = arith.constant 0 : index
        %62 = vector.load %arg3[%61, %c0_39, %c0_40] : memref<25x8x40xf32, #tpu.memory_space<vmem>>, vector<1x8x40xf32>
        %63 = vector.shape_cast %62 : vector<1x8x40xf32> to vector<8x40xf32>
        %cst_41 = arith.constant dense<0.000000e+00> : vector<8x96xf32>
        %64 = tpu.matmul %63, %58, %cst_41 {dimension_numbers = #tpu.dot_dimension_numbers<[1], [0], [0], [1], [0, 0, 1, 1], [], []>} : vector<8x40xf32>, vector<40x96xf32>, vector<8x96xf32> -> vector<8x96xf32>
        %65 = arith.addf %arg10, %64 : vector<8x96xf32>
        %66 = arith.addi %0, %arg9 : i32
        %c0_42 = arith.constant 0 : index
        %67 = arith.index_cast %66 : i32 to index
        %c0_43 = arith.constant 0 : index
        %c12 = arith.constant 12 : index
        %68 = vector.load %arg2[%c0_42, %67, %c0_43, %c12] : memref<1x12x8x156xf32, #tpu.memory_space<vmem>>, vector<1x1x8x96xf32>
        %69 = vector.shape_cast %68 : vector<1x1x8x96xf32> to vector<8x96xf32>
        %70 = arith.addi %0, %arg9 : i32
        %c0_44 = arith.constant 0 : index
        %71 = arith.index_cast %70 : i32 to index
        %c0_45 = arith.constant 0 : index
        %c13 = arith.constant 13 : index
        %72 = vector.load %arg2[%c0_44, %71, %c0_45, %c13] : memref<1x12x8x156xf32, #tpu.memory_space<vmem>>, vector<1x1x8x96xf32>
        %73 = vector.shape_cast %72 : vector<1x1x8x96xf32> to vector<8x96xf32>
        %74 = arith.addi %0, %arg9 : i32
        %c0_46 = arith.constant 0 : index
        %75 = arith.index_cast %74 : i32 to index
        %c0_47 = arith.constant 0 : index
        %c14 = arith.constant 14 : index
        %76 = vector.load %arg2[%c0_46, %75, %c0_47, %c14] : memref<1x12x8x156xf32, #tpu.memory_space<vmem>>, vector<1x1x8x96xf32>
        %77 = vector.shape_cast %76 : vector<1x1x8x96xf32> to vector<8x96xf32>
        %78 = arith.addi %0, %arg9 : i32
        %c0_48 = arith.constant 0 : index
        %79 = arith.index_cast %78 : i32 to index
        %c0_49 = arith.constant 0 : index
        %c15 = arith.constant 15 : index
        %80 = vector.load %arg2[%c0_48, %79, %c0_49, %c15] : memref<1x12x8x156xf32, #tpu.memory_space<vmem>>, vector<1x1x8x96xf32>
        %81 = vector.shape_cast %80 : vector<1x1x8x96xf32> to vector<8x96xf32>
        %82 = arith.addi %0, %arg9 : i32
        %c0_50 = arith.constant 0 : index
        %83 = arith.index_cast %82 : i32 to index
        %c0_51 = arith.constant 0 : index
        %c16 = arith.constant 16 : index
        %84 = vector.load %arg2[%c0_50, %83, %c0_51, %c16] : memref<1x12x8x156xf32, #tpu.memory_space<vmem>>, vector<1x1x8x96xf32>
        %85 = vector.shape_cast %84 : vector<1x1x8x96xf32> to vector<8x96xf32>
        %86 = tpu.concatenate %69, %73, %77, %81, %85 in 0 : vector<8x96xf32>, vector<8x96xf32>, vector<8x96xf32>, vector<8x96xf32>, vector<8x96xf32> -> vector<40x96xf32>
        %c5_i32_52 = arith.constant 5 : i32
        %87 = arith.muli %arg9, %c5_i32_52 : i32
        %c1_i32_53 = arith.constant 1 : i32
        %88 = arith.addi %87, %c1_i32_53 : i32
        %89 = arith.index_cast %88 : i32 to index
        %c0_54 = arith.constant 0 : index
        %c0_55 = arith.constant 0 : index
        %90 = vector.load %arg3[%89, %c0_54, %c0_55] : memref<25x8x40xf32, #tpu.memory_space<vmem>>, vector<1x8x40xf32>
        %91 = vector.shape_cast %90 : vector<1x8x40xf32> to vector<8x40xf32>
        %cst_56 = arith.constant dense<0.000000e+00> : vector<8x96xf32>
        %92 = tpu.matmul %91, %86, %cst_56 {dimension_numbers = #tpu.dot_dimension_numbers<[1], [0], [0], [1], [0, 0, 1, 1], [], []>} : vector<8x40xf32>, vector<40x96xf32>, vector<8x96xf32> -> vector<8x96xf32>
        %93 = arith.addf %65, %92 : vector<8x96xf32>
        %94 = arith.addi %0, %arg9 : i32
        %c0_57 = arith.constant 0 : index
        %95 = arith.index_cast %94 : i32 to index
        %c0_58 = arith.constant 0 : index
        %c24 = arith.constant 24 : index
        %96 = vector.load %arg2[%c0_57, %95, %c0_58, %c24] : memref<1x12x8x156xf32, #tpu.memory_space<vmem>>, vector<1x1x8x96xf32>
        %97 = vector.shape_cast %96 : vector<1x1x8x96xf32> to vector<8x96xf32>
        %98 = arith.addi %0, %arg9 : i32
        %c0_59 = arith.constant 0 : index
        %99 = arith.index_cast %98 : i32 to index
        %c0_60 = arith.constant 0 : index
        %c25 = arith.constant 25 : index
        %100 = vector.load %arg2[%c0_59, %99, %c0_60, %c25] : memref<1x12x8x156xf32, #tpu.memory_space<vmem>>, vector<1x1x8x96xf32>
        %101 = vector.shape_cast %100 : vector<1x1x8x96xf32> to vector<8x96xf32>
        %102 = arith.addi %0, %arg9 : i32
        %c0_61 = arith.constant 0 : index
        %103 = arith.index_cast %102 : i32 to index
        %c0_62 = arith.constant 0 : index
        %c26_63 = arith.constant 26 : index
        %104 = vector.load %arg2[%c0_61, %103, %c0_62, %c26_63] : memref<1x12x8x156xf32, #tpu.memory_space<vmem>>, vector<1x1x8x96xf32>
        %105 = vector.shape_cast %104 : vector<1x1x8x96xf32> to vector<8x96xf32>
        %106 = arith.addi %0, %arg9 : i32
        %c0_64 = arith.constant 0 : index
        %107 = arith.index_cast %106 : i32 to index
        %c0_65 = arith.constant 0 : index
        %c27 = arith.constant 27 : index
        %108 = vector.load %arg2[%c0_64, %107, %c0_65, %c27] : memref<1x12x8x156xf32, #tpu.memory_space<vmem>>, vector<1x1x8x96xf32>
        %109 = vector.shape_cast %108 : vector<1x1x8x96xf32> to vector<8x96xf32>
        %110 = arith.addi %0, %arg9 : i32
        %c0_66 = arith.constant 0 : index
        %111 = arith.index_cast %110 : i32 to index
        %c0_67 = arith.constant 0 : index
        %c28 = arith.constant 28 : index
        %112 = vector.load %arg2[%c0_66, %111, %c0_67, %c28] : memref<1x12x8x156xf32, #tpu.memory_space<vmem>>, vector<1x1x8x96xf32>
        %113 = vector.shape_cast %112 : vector<1x1x8x96xf32> to vector<8x96xf32>
        %114 = tpu.concatenate %97, %101, %105, %109, %113 in 0 : vector<8x96xf32>, vector<8x96xf32>, vector<8x96xf32>, vector<8x96xf32>, vector<8x96xf32> -> vector<40x96xf32>
        %c5_i32_68 = arith.constant 5 : i32
        %115 = arith.muli %arg9, %c5_i32_68 : i32
        %c2_i32_69 = arith.constant 2 : i32
        %116 = arith.addi %115, %c2_i32_69 : i32
        %117 = arith.index_cast %116 : i32 to index
        %c0_70 = arith.constant 0 : index
        %c0_71 = arith.constant 0 : index
        %118 = vector.load %arg3[%117, %c0_70, %c0_71] : memref<25x8x40xf32, #tpu.memory_space<vmem>>, vector<1x8x40xf32>
        %119 = vector.shape_cast %118 : vector<1x8x40xf32> to vector<8x40xf32>
        %cst_72 = arith.constant dense<0.000000e+00> : vector<8x96xf32>
        %120 = tpu.matmul %119, %114, %cst_72 {dimension_numbers = #tpu.dot_dimension_numbers<[1], [0], [0], [1], [0, 0, 1, 1], [], []>} : vector<8x40xf32>, vector<40x96xf32>, vector<8x96xf32> -> vector<8x96xf32>
        %121 = arith.addf %93, %120 : vector<8x96xf32>
        %122 = arith.addi %0, %arg9 : i32
        %c0_73 = arith.constant 0 : index
        %123 = arith.index_cast %122 : i32 to index
        %c0_74 = arith.constant 0 : index
        %c36 = arith.constant 36 : index
        %124 = vector.load %arg2[%c0_73, %123, %c0_74, %c36] : memref<1x12x8x156xf32, #tpu.memory_space<vmem>>, vector<1x1x8x96xf32>
        %125 = vector.shape_cast %124 : vector<1x1x8x96xf32> to vector<8x96xf32>
        %126 = arith.addi %0, %arg9 : i32
        %c0_75 = arith.constant 0 : index
        %127 = arith.index_cast %126 : i32 to index
        %c0_76 = arith.constant 0 : index
        %c37 = arith.constant 37 : index
        %128 = vector.load %arg2[%c0_75, %127, %c0_76, %c37] : memref<1x12x8x156xf32, #tpu.memory_space<vmem>>, vector<1x1x8x96xf32>
        %129 = vector.shape_cast %128 : vector<1x1x8x96xf32> to vector<8x96xf32>
        %130 = arith.addi %0, %arg9 : i32
        %c0_77 = arith.constant 0 : index
        %131 = arith.index_cast %130 : i32 to index
        %c0_78 = arith.constant 0 : index
        %c38 = arith.constant 38 : index
        %132 = vector.load %arg2[%c0_77, %131, %c0_78, %c38] : memref<1x12x8x156xf32, #tpu.memory_space<vmem>>, vector<1x1x8x96xf32>
        %133 = vector.shape_cast %132 : vector<1x1x8x96xf32> to vector<8x96xf32>
        %134 = arith.addi %0, %arg9 : i32
        %c0_79 = arith.constant 0 : index
        %135 = arith.index_cast %134 : i32 to index
        %c0_80 = arith.constant 0 : index
        %c39 = arith.constant 39 : index
        %136 = vector.load %arg2[%c0_79, %135, %c0_80, %c39] : memref<1x12x8x156xf32, #tpu.memory_space<vmem>>, vector<1x1x8x96xf32>
        %137 = vector.shape_cast %136 : vector<1x1x8x96xf32> to vector<8x96xf32>
        %138 = arith.addi %0, %arg9 : i32
        %c0_81 = arith.constant 0 : index
        %139 = arith.index_cast %138 : i32 to index
        %c0_82 = arith.constant 0 : index
        %c40 = arith.constant 40 : index
        %140 = vector.load %arg2[%c0_81, %139, %c0_82, %c40] : memref<1x12x8x156xf32, #tpu.memory_space<vmem>>, vector<1x1x8x96xf32>
        %141 = vector.shape_cast %140 : vector<1x1x8x96xf32> to vector<8x96xf32>
        %142 = tpu.concatenate %125, %129, %133, %137, %141 in 0 : vector<8x96xf32>, vector<8x96xf32>, vector<8x96xf32>, vector<8x96xf32>, vector<8x96xf32> -> vector<40x96xf32>
        %c5_i32_83 = arith.constant 5 : i32
        %143 = arith.muli %arg9, %c5_i32_83 : i32
        %c3_i32 = arith.constant 3 : i32
        %144 = arith.addi %143, %c3_i32 : i32
        %145 = arith.index_cast %144 : i32 to index
        %c0_84 = arith.constant 0 : index
        %c0_85 = arith.constant 0 : index
        %146 = vector.load %arg3[%145, %c0_84, %c0_85] : memref<25x8x40xf32, #tpu.memory_space<vmem>>, vector<1x8x40xf32>
        %147 = vector.shape_cast %146 : vector<1x8x40xf32> to vector<8x40xf32>
        %cst_86 = arith.constant dense<0.000000e+00> : vector<8x96xf32>
        %148 = tpu.matmul %147, %142, %cst_86 {dimension_numbers = #tpu.dot_dimension_numbers<[1], [0], [0], [1], [0, 0, 1, 1], [], []>} : vector<8x40xf32>, vector<40x96xf32>, vector<8x96xf32> -> vector<8x96xf32>
        %149 = arith.addf %121, %148 : vector<8x96xf32>
        %150 = arith.addi %0, %arg9 : i32
        %c0_87 = arith.constant 0 : index
        %151 = arith.index_cast %150 : i32 to index
        %c0_88 = arith.constant 0 : index
        %c48 = arith.constant 48 : index
        %152 = vector.load %arg2[%c0_87, %151, %c0_88, %c48] : memref<1x12x8x156xf32, #tpu.memory_space<vmem>>, vector<1x1x8x96xf32>
        %153 = vector.shape_cast %152 : vector<1x1x8x96xf32> to vector<8x96xf32>
        %154 = arith.addi %0, %arg9 : i32
        %c0_89 = arith.constant 0 : index
        %155 = arith.index_cast %154 : i32 to index
        %c0_90 = arith.constant 0 : index
        %c49 = arith.constant 49 : index
        %156 = vector.load %arg2[%c0_89, %155, %c0_90, %c49] : memref<1x12x8x156xf32, #tpu.memory_space<vmem>>, vector<1x1x8x96xf32>
        %157 = vector.shape_cast %156 : vector<1x1x8x96xf32> to vector<8x96xf32>
        %158 = arith.addi %0, %arg9 : i32
        %c0_91 = arith.constant 0 : index
        %159 = arith.index_cast %158 : i32 to index
        %c0_92 = arith.constant 0 : index
        %c50 = arith.constant 50 : index
        %160 = vector.load %arg2[%c0_91, %159, %c0_92, %c50] : memref<1x12x8x156xf32, #tpu.memory_space<vmem>>, vector<1x1x8x96xf32>
        %161 = vector.shape_cast %160 : vector<1x1x8x96xf32> to vector<8x96xf32>
        %162 = arith.addi %0, %arg9 : i32
        %c0_93 = arith.constant 0 : index
        %163 = arith.index_cast %162 : i32 to index
        %c0_94 = arith.constant 0 : index
        %c51 = arith.constant 51 : index
        %164 = vector.load %arg2[%c0_93, %163, %c0_94, %c51] : memref<1x12x8x156xf32, #tpu.memory_space<vmem>>, vector<1x1x8x96xf32>
        %165 = vector.shape_cast %164 : vector<1x1x8x96xf32> to vector<8x96xf32>
        %166 = arith.addi %0, %arg9 : i32
        %c0_95 = arith.constant 0 : index
        %167 = arith.index_cast %166 : i32 to index
        %c0_96 = arith.constant 0 : index
        %c52 = arith.constant 52 : index
        %168 = vector.load %arg2[%c0_95, %167, %c0_96, %c52] : memref<1x12x8x156xf32, #tpu.memory_space<vmem>>, vector<1x1x8x96xf32>
        %169 = vector.shape_cast %168 : vector<1x1x8x96xf32> to vector<8x96xf32>
        %170 = tpu.concatenate %153, %157, %161, %165, %169 in 0 : vector<8x96xf32>, vector<8x96xf32>, vector<8x96xf32>, vector<8x96xf32>, vector<8x96xf32> -> vector<40x96xf32>
        %c5_i32_97 = arith.constant 5 : i32
        %171 = arith.muli %arg9, %c5_i32_97 : i32
        %c4_i32 = arith.constant 4 : i32
        %172 = arith.addi %171, %c4_i32 : i32
        %173 = arith.index_cast %172 : i32 to index
        %c0_98 = arith.constant 0 : index
        %c0_99 = arith.constant 0 : index
        %174 = vector.load %arg3[%173, %c0_98, %c0_99] : memref<25x8x40xf32, #tpu.memory_space<vmem>>, vector<1x8x40xf32>
        %175 = vector.shape_cast %174 : vector<1x8x40xf32> to vector<8x40xf32>
        %cst_100 = arith.constant dense<0.000000e+00> : vector<8x96xf32>
        %176 = tpu.matmul %175, %170, %cst_100 {dimension_numbers = #tpu.dot_dimension_numbers<[1], [0], [0], [1], [0, 0, 1, 1], [], []>} : vector<8x40xf32>, vector<40x96xf32>, vector<8x96xf32> -> vector<8x96xf32>
        %177 = arith.addf %149, %176 : vector<8x96xf32>
        scf.yield %177 : vector<8x96xf32>
      }
      %c5_i32_15 = arith.constant 5 : i32
      %22 = vector.broadcast %17 : vector<8x1xf32> to vector<8x96xf32>
      %23 = arith.addf %21, %22 : vector<8x96xf32>
      %cst_16 = arith.constant 0.000000e+00 : f32
      %24 = vector.broadcast %cst_16 : f32 to vector<8x96xf32>
      %25 = arith.cmpf oge, %23, %24 : vector<8x96xf32>
      %26 = vector.broadcast %18 : vector<1x1xf32> to vector<8x96xf32>
      %27 = arith.mulf %26, %23 : vector<8x96xf32>
      %28 = arith.select %25, %23, %27 : vector<8x96xi1>, vector<8x96xf32>
      %c0_17 = arith.constant 0 : index
      %c0_18 = arith.constant 0 : index
      %29 = vector.load %arg6[%c0_17, %c0_18] : memref<1x96xf32, #tpu.memory_space<vmem>>, vector<1x96xf32>
      %30 = vector.broadcast %29 : vector<1x96xf32> to vector<8x96xf32>
      %31 = arith.mulf %28, %30 : vector<8x96xf32>
      %c0_19 = arith.constant 0 : index
      %c0_20 = arith.constant 0 : index
      %c0_21 = arith.constant 0 : index
      %c26 = arith.constant 26 : index
      %32 = vector.load %arg7[%c0_19, %c0_20, %c0_21, %c26] : memref<1x1x8x156xf32, #tpu.memory_space<vmem>>, vector<1x1x8x96xf32>
      %33 = vector.shape_cast %32 : vector<1x1x8x96xf32> to vector<8x96xf32>
      %34 = arith.addf %31, %33 : vector<8x96xf32>
      %c0_22 = arith.constant 0 : index
      %c0_23 = arith.constant 0 : index
      %c0_24 = arith.constant 0 : index
      %c26_25 = arith.constant 26 : index
      %35 = vector.load %arg8[%c0_22, %c0_23, %c0_24, %c26_25] : memref<1x1x8x156xf32, #tpu.memory_space<vmem>>, vector<1x1x8x96xf32>
      %36 = vector.shape_cast %35 : vector<1x1x8x96xf32> to vector<8x96xf32>
      %37 = vector.shape_cast %34 : vector<8x96xf32> to vector<1x1x8x96xf32>
      tpu.vector_store %arg8[%c0_22, %c0_23, %c0_24, %c26_25], %37 {strides = array<i32>} : memref<1x1x8x156xf32, #tpu.memory_space<vmem>>, vector<1x1x8x96xf32>,
    } else {
    }
    return
  }
  func.func @transform_0(%arg0: i32, %arg1: i32) -> (i32, i32, i32, i32) {
    %c0_i32 = arith.constant 0 : i32
    %c0_i32_0 = arith.constant 0 : i32
    %c0_i32_1 = arith.constant 0 : i32
    %c0_i32_2 = arith.constant 0 : i32
    return %arg0, %c0_i32, %c0_i32_0, %c0_i32_1 : i32, i32, i32, i32
  }
  func.func @transform_1(%arg0: i32, %arg1: i32) -> (i32, i32, i32) {
    %c0_i32 = arith.constant 0 : i32
    %c0_i32_0 = arith.constant 0 : i32
    %c0_i32_1 = arith.constant 0 : i32
    %c0_i32_2 = arith.constant 0 : i32
    return %c0_i32, %c0_i32_0, %c0_i32_1 : i32, i32, i32
  }
  func.func @transform_2(%arg0: i32, %arg1: i32) -> (i32, i32) {
    %c0_i32 = arith.constant 0 : i32
    %c0_i32_0 = arith.constant 0 : i32
    %c0_i32_1 = arith.constant 0 : i32
    return %c0_i32, %c0_i32_0 : i32, i32
  }
  func.func @transform_3(%arg0: i32, %arg1: i32) -> (i32, i32) {
    %c0_i32 = arith.constant 0 : i32
    %c0_i32_0 = arith.constant 0 : i32
    %c0_i32_1 = arith.constant 0 : i32
    return %c0_i32, %c0_i32_0 : i32, i32
  }
  func.func @transform_4(%arg0: i32, %arg1: i32) -> (i32, i32) {
    %c0_i32 = arith.constant 0 : i32
    %c0_i32_0 = arith.constant 0 : i32
    %c0_i32_1 = arith.constant 0 : i32
    return %c0_i32, %c0_i32_0 : i32, i32
  }
  func.func @transform_5(%arg0: i32, %arg1: i32) -> (i32, i32, i32, i32) {
    %c0_i32 = arith.constant 0 : i32
    %c0_i32_0 = arith.constant 0 : i32
    %c0_i32_1 = arith.constant 0 : i32
    return %arg0, %arg1, %c0_i32, %c0_i32_0 : i32, i32, i32, i32
  }
  func.func @transform_6(%arg0: i32, %arg1: i32) -> (i32, i32, i32, i32) {
    %c0_i32 = arith.constant 0 : i32
    %c0_i32_0 = arith.constant 0 : i32
    %c0_i32_1 = arith.constant 0 : i32
    return %arg0, %arg1, %c0_i32, %c0_i32_0 : i32, i32, i32, i32
  }
}

</mosaic_0001>

<bundles_post_ra>
// kernel: down_forward.3
= control target key start
LH: loop header
LB: loop body
LE: loop exit
PB: predicated region body
PF: predicated region fallthrough
CT: control target
= control target key end

     0   :  { %s629_s20 = smov 0   ;;  %s631_s21 = smov 0   ;;  %s712_s0 = inlined_call_operand.vmem [shape: f32[2,8,32,96], index: 0, kind: input, shape index: {}]   ;;  %s713_s1 = inlined_call_operand.vmem [shape: f32[8,32], index: 1, kind: input, shape index: {}]   ;;  %s714_s2 = inlined_call_operand.vmem [shape: f32[8,1], index: 2, kind: input, shape index: {}]   ;;  %s715_s3 = inlined_call_operand.<no memory space> [shape: f32[1,1], index: 3, kind: input, shape index: {}]   ;;  %s716_s4 = inlined_call_operand.vmem [shape: f32[1,96], index: 4, kind: input, shape index: {}]   ;;  %s717_s5 = inlined_call_operand.vmem [shape: f32[2,12,8,156], index: 5, kind: output, shape index: {}]  }
   0x1   :  { %v10_v0 = vstv %s715_s3  ;;  %s633_s22 = smov 0   ;;  %s635_s23 = smov 0  }
   0x2   :  { %11 = vst [vmem:[#allocation2] sm:$0x1] %v10_v0  ;;  %s637_s24 = smov 0  }
   0x3 LB: > { %s26_s3 = sadd.s32 1, %s582_s22  ;;  %s29_s25 = sadd.s32 1, %s586_s23  ;;  %s590_s24 = sphi %s637_s24, %s17_s24   ;;  %s586_s23 = sphi %s635_s23, %s722_s23   ;;  %s582_s22 = sphi %s633_s22, %s721_s22   ;;  %s578_s21 = sphi %s631_s21, %s720_s21   ;;  %s574_s20 = sphi %s629_s20, %s719_s20  }
   0x4   : > { %p27_p0 = scmp.ge.s32.totalorder %s26_s3, 12  ;;  %p483_p1 = scmp.ge.s32.totalorder %s590_s24, 1 }
   0x5   : > { %p229_p2 = scmp.lt.s32.totalorder %s590_s24, 25 }
   0x6   : > { %s724_s3 = smov (%p27_p0, %s26_s3), 0  ;;  %s726_s25 = smov (!%p27_p0, %s29_s25), %s586_s23 }
   0x7   : > { %p230_p3 = pnand %p483_p1, %p229_p2  ;;  %p31_p4 = scmp.ge.s32.totalorder %s726_s25, 2 }
   0x8   : > { %s484_s26 = sadd.s32 (!%p230_p3), 4294967294, %s574_s20  ;;  %p275_p5 = scmp.lt.s32.totalorder (!%p230_p3), %s578_s21, 1 }
   0x9   : > { %s728_s25 = smov (%p31_p4, %s726_s25), 0  ;;  %233 = sbr.rel (%p230_p3) target bundleno = 289 (0x121), region = 40 }
   0xa   : > { %p271_p6 = scmp.gt.s32.totalorder (!%p230_p3), %s484_s26, 0  ;;  %p485_p7 = scmp.lt.s32.totalorder (!%p230_p3), %s484_s26, 7 }
   0xb   : > { %p291_p8 = scmp.lt.s32.totalorder (!%p230_p3), %s574_s20, 11  ;;  %p298_p10 = scmp.ge.s32.totalorder (!%p230_p3), %s574_s20, 2 }
   0xc   : > { %p299_p11 = scmp.lt.s32.totalorder (!%p230_p3), %s574_s20, 10 }
   0xe   : > { %s730_s21 = smov (!%p275_p5, %s578_s21), 1  ;;  %s732_s26 = smov (!%p271_p6, %s484_s26), 0 }
   0xf   : > { %s491_s27 = sshll.u32 %s730_s21, 5  ;;  %s734_s26 = smov (!%p485_p7, %s732_s26), 7 }
  0x10   : > { %s292_s28 = scalar_select %p291_p8, %s574_s20, 11 }
  0x11   : > { %p277_p9 = scmp.lt.s32.totalorder %s734_s26, 7  ;;  %s504_s29 = smul.u32 24, %s730_s21 }
  0x12   : > { %s493_s30 = sshll.u32 %s292_s28, 1  ;;  %p671_p12 = pnand %p299_p11, %p298_p10 }
  0x13   : > { %s736_s26 = smov (!%p277_p9, %s734_s26), 7  ;;  %s295_s6 = sadd.s32 %s504_s29, %s493_s30 }
  0x14   : > { %s490_s7 = sshll.u32 %s736_s26, 2  ;;  %s494_s8 = sshll.u32 %s295_s6, 3 }
  0x15   : > { %s281_s9 = sadd.s32 %s491_s27, %s490_s7  ;;  %s669_s12 = scalar_lea.vmem %s717_s5, %s494_s8 }
  0x16   : > { %s492_s13 = sshll.u32 %s281_s9, 3  ;;  %303 = sbr.rel (%p671_p12) target bundleno = 284 (0x11c), region = 44 }
  0x17   : > { %s283_s17 = scalar_lea.vmem %s712_s0, %s492_s13  ;;  %s593_s28 = smov (!%p671_p12), 26  }
  0x1b   : > { %v314_v1 = vld [vmem:[%s283_s17 + $0x18] sm:$0xff]  ;;  %v313_v2 = vld [vmem:[%s283_s17 + $0x10] sm:$0xff]  ;;  %v315_v3 = vld [vmem:[%s714_s2] sm:$0xff]  ;;  %v592_v4 = vmov 0   ;;  %vm321_vm0 = vcmask 261120   ;;  %vm304_vm2 = vcmask 211968  }
  0x1c   : > { %337 = vmatpush.msra.mxu0 %v314_v1  ;;  %549 = vset.pattern.permute.xlu0 %v592_v4  ;;  %v312_v5 = vld [vmem:[%s283_s17 + $0x8] sm:$0xff]  ;;  %v311_v6 = vld [vmem:[%s283_s17] sm:$0xff]  ;;  %v594_v17 = vmov 0.0   ;;  %vm306_vm3 = vcmask 1048528   ;;  %vm308_vm4 = vcmask 228352   ;;  %vm364_vm5 = vcmask 998608  }
  0x1d   : > { %318 = vperm.xlu0 %549, %v315_v3   ;;  %v310_v7 = vld [vmem:[%s713_s1] sm:$0xff]  ;;  %305 = vst.msk [vmem:[%s669_s12] sm:$0xff] %vm304_vm2, %v594_v17 }
  0x1e   : > { %338 = vmatpush.msra.mxu0 %v313_v2  ;;  %v550_v8 = vld [vmem:[#allocation2] ss:$0 sm:$0xff]  ;;  %307 = vst.msk [vmem:[%s669_s12] sm:$0xff] %vm306_vm3, %v594_v17 }
  0x1f   : > { %v551_v13 = vld [vmem:[%s716_s4] ss:$0 sm:$0xff]  ;;  %309 = vst.msk [vmem:[%s669_s12 + $0x8] sm:$0xff] %vm308_vm4, %v594_v17 }
  0x20   : > { %339 = vmatpush.msra.mxu0 %v312_v5 }
  0x22   : > { %340 = vmatpush.msra.mxu0 %v311_v6 }
  0x23   : > { %495 = vmatmul.msk.f32.vlgmr.msra.gmra.mxu0 %vm321_vm0, %v310_v7 }
  0x25   : > { %350 = vperm.xlu0 %549, %v550_v8  }
  0x8f   : > { %v319_v9 = vpop.permute.xlu0 %318 }
  0x97   : > { %v351_v12 = vpop.permute.xlu0 %350 }
  0xa0   : > { %v342_v10 = vpop.f32.mrf.mxu0 }
  0xa1   : > { %v343_v11 = vadd.f32 %v342_v10, %v319_v9 }
  0xa3   : > { %v353_v14 = vmul.f32 %v351_v12, %v343_v11  ;;  %vm345_vm1 = vcmp.ge.f32.partialorder %v343_v11, 0.0 }
  0xa5   : > { %v354_v15 = vsel %vm345_vm1, %v343_v11, %v353_v14 }
  0xa6   : > { %v359_v16 = vmul.f32 %v551_v13, %v354_v15 }
  0xa8   : > { %361 = vrot.lane.b32.xlu1 %v359_v16, %s593_s28 }
 0x11a   : > { %v362_v18 = vpop.permute.xlu1 %361 }
 0x11b   : > { %365 = vst.msk [vmem:[%s669_s12] sm:$0xff] %vm364_vm5, %v362_v18 }
 0x11c PF: > { %368 = sbr.rel (!%p671_p12) target bundleno = 289 (0x121), region = 48  ;;  %vm370_vm6 = vcmask (%p671_p12), 228352   ;;  %v595_v19 = vmov (%p671_p12), 0.0  }
 0x11d   : > { %369 = vst [vmem:[%s669_s12] sm:$0xff] (%p671_p12), %v595_v19 }
 0x11e   : > { %371 = vst.msk [vmem:[%s669_s12 + $0x8] sm:$0xff] (%p671_p12), %vm370_vm6, %v595_v19 }
 0x121 PF: > { %s17_s24 = sadd.s32 1, %s590_s24   ;;  %s719_s20 = smov %s582_s22 }
 0x122   : > { %p14_p13 = scmp.ge.s32.totalorder %s17_s24, 26   ;;  %s720_s21 = smov %s586_s23 }
 0x123   : > { %s721_s22 = smov %s724_s3  ;;  %s722_s23 = smov %s728_s25 }
 0x124   :  { %16 = sbr.rel (!%p14_p13) target bundleno = 3 (0x3), region = 78 }

// kernel: down_forward.4
= control target key start
LH: loop header
LB: loop body
LE: loop exit
PB: predicated region body
PF: predicated region fallthrough
CT: control target
= control target key end

     0   :  { %s988_s20 = smov 0   ;;  %s990_s21 = smov 0   ;;  %s1134_s0 = inlined_call_operand.vmem [shape: f32[2,12,8,156], index: 0, kind: input, shape index: {}]   ;;  %s1135_s1 = inlined_call_operand.vmem [shape: f32[25,8,40], index: 1, kind: input, shape index: {}]   ;;  %s1136_s2 = inlined_call_operand.vmem [shape: f32[8,1], index: 2, kind: input, shape index: {}]   ;;  %s1137_s3 = inlined_call_operand.<no memory space> [shape: f32[1,1], index: 3, kind: input, shape index: {}]   ;;  %s1138_s4 = inlined_call_operand.vmem [shape: f32[1,96], index: 4, kind: input, shape index: {}]   ;;  %s1139_s5 = inlined_call_operand.vmem [shape: f32[2,12,8,156], index: 5, kind: output, shape index: {}]  }
   0x1   :  { %v10_v0 = vstv %s1137_s3  ;;  %s992_s22 = smov 0   ;;  %s994_s23 = smov 0  }
   0x2   :  { %11 = vst [vmem:[#allocation2] sm:$0x1] %v10_v0  ;;  %s996_s24 = smov 0  }
   0x3 LB: > { %s26_s3 = sadd.s32 1, %s925_s22  ;;  %s29_s25 = sadd.s32 1, %s929_s23  ;;  %s933_s24 = sphi %s996_s24, %s17_s24   ;;  %s929_s23 = sphi %s994_s23, %s1145_s23   ;;  %s925_s22 = sphi %s992_s22, %s1144_s22   ;;  %s921_s21 = sphi %s990_s21, %s1143_s21   ;;  %s917_s20 = sphi %s988_s20, %s1142_s20  }
   0x4   : > { %p27_p0 = scmp.ge.s32.totalorder %s26_s3, 12  ;;  %p701_p1 = scmp.ge.s32.totalorder %s933_s24, 1 }
   0x5   : > { %p203_p2 = scmp.lt.s32.totalorder %s933_s24, 25 }
   0x6   : > { %s1147_s3 = smov (%p27_p0, %s26_s3), 0  ;;  %s1149_s25 = smov (!%p27_p0, %s29_s25), %s929_s23 }
   0x7   : > { %p204_p3 = pnand %p701_p1, %p203_p2  ;;  %p31_p4 = scmp.ge.s32.totalorder %s1149_s25, 2 }
   0x8   : > { %p235_p5 = scmp.lt.s32.totalorder (!%p204_p3), %s921_s21, 1  ;;  %p242_p6 = scmp.lt.s32.totalorder (!%p204_p3), %s917_s20, 11 }
   0x9   : > { %s1151_s25 = smov (%p31_p4, %s1149_s25), 0  ;;  %207 = sbr.rel (%p204_p3) target bundleno = 695 (0x2b7), region = 40 }
   0xa   : > { %s705_s26 = sadd.s32 (!%p204_p3), 4294967294, %s917_s20  ;;  %p250_p7 = scmp.ge.s32.totalorder (!%p204_p3), %s917_s20, 2 }
   0xb   : > { %p251_p8 = scmp.lt.s32.totalorder (!%p204_p3), %s917_s20, 10 }
   0xd   : > { %p1030_p9 = pnand (!%p204_p3), %p251_p8, %p250_p7 }
   0xe   : > { %s1153_s21 = smov (!%p235_p5, %s921_s21), 1  ;;  %s1053_s17 = smov (!%p1030_p9), 0  }
   0xf   : > { %s243_s27 = scalar_select %p242_p6, %s917_s20, 11 }
  0x10   : > { %s725_s28 = smul.u32 192, %s1153_s21 }
  0x11   : > { %s703_s29 = sshll.u32 %s243_s27, 1  ;;  %s726_s30 = smul.u32 24, %s1153_s21 }
  0x12   : > { %s1028_s8 = scalar_lea.vmem %s1134_s0, %s725_s28  ;;  %255 = sbr.rel (%p1030_p9) target bundleno = 690 (0x2b2), region = 44 }
  0x13   : > { %s246_s10 = sadd.s32 %s726_s30, %s703_s29 }
  0x14   : > { %s704_s11 = sshll.u32 %s246_s10, 3 }
  0x15   : > { %s1037_s14 = scalar_lea.vmem %s1139_s5, %s704_s11 }
  0x17   : > { %vm256_vm0 = vcmask 211968   ;;  %vm258_vm1 = vcmask 1048528   ;;  %vm260_vm2 = vcmask 228352   ;;  %v1044_v1 = vld [vmem:[%s1136_s2] sm:$0xff]  ;;  %v943_v2 = vmov 0.0  }
  0x18   : > { %257 = vst.msk [vmem:[%s1037_s14] sm:$0xff] %vm256_vm0, %v943_v2  ;;  %v1047_v3 = vld [vmem:[#allocation2] sm:$0x1]  ;;  %v1051_v4 = vmov 0.0  }
  0x19   : > { %259 = vst.msk [vmem:[%s1037_s14] sm:$0xff] %vm258_vm1, %v943_v2 }
  0x1a   : > { %261 = vst.msk [vmem:[%s1037_s14 + $0x8] sm:$0xff] %vm260_vm2, %v943_v2 }
  0x1b LB: >> { %s271_s18 = sadd.s32 %s941_s17, %s705_s26  ;;  %s944_s27 = smov 125   ;;  %vm424_vm3 = vcmask 1022976   ;;  %vm418_vm4 = vcmask 1031168   ;;  %vm412_vm5 = vcmask 1039360   ;;  %vm430_vm6 = vcmask 1014784   ;;  %s941_s17 = sphi %s1053_s17, %s269_s17   ;;  %v937_v4 = vphi %v1051_v4, %v1141_v4  }
  0x1c   : >> { %s724_s19 = sshll.u32 %s271_s18, 4  ;;  %s945_s28 = smov 124   ;;  %vm293_vm7 = vcmask 326656   ;;  %vm456_vm8 = vcmask 752640   ;;  %vm515_vm9 = vcmask 654336  }
  0x1d   : >> { %s274_s21 = scalar_lea.vmem %s1028_s8, %s724_s19  ;;  %s946_s29 = smov 126  }
  0x1e   : >> { %v275_v5 = vld [vmem:[%s274_s21] sm:$0xff]  ;;  %v405_v7 = vld [vmem:[%s274_s21 + $0x8] sm:$0xff]  ;;  %s947_s30 = smov 127   ;;  %s948_s6 = smov 92  }
  0x1f   : >> { %v800_v6 = vpack.i.bf16 %v275_v5, %v275_v5  ;;  %v815_v8 = vpack.i.bf16 %v405_v7, %v275_v5  ;;  %s949_s7 = smov 104   ;;  %s950_s10 = smov 116  }
  0x20   : >> { %s951_s11 = smov 80   ;;  %s708_s12 = smul.u32 40, %s941_s17 }
  0x21   : >> { %801 = vrot.lane.b32.xlu1 %v800_v6, %s944_s27  ;;  %796 = vrot.lane.b32.xlu0 %v800_v6, %s945_s28  ;;  %s269_s17 = sadd.s32 1, %s941_s17  }
  0x22   : >> { %806 = vrot.lane.b32.xlu2 %v800_v6, %s946_s29  ;;  %s1079_s16 = scalar_lea.vmem %s1135_s1, %s708_s12  ;;  %p266_p10 = scmp.ge.s32.totalorder %s269_s17, 5  }
  0x23   : >> { %v292_v45 = vld [vmem:[%s1079_s16] sm:$0xff]  ;;  %v714_v49 = vld [vmem:[%s1079_s16 + $0x10] sm:$0xff]  ;;  %v711_v55 = vld [vmem:[%s1079_s16 + $0x8] sm:$0xff]  ;;  %s953_s17 = smov (%p266_p10), 26   ;;  %vm574_vm11 = vcmask (%p266_p10), 998608  }
  0x29   : >> { %422 = vrot.lane.b32.xlu1 %v405_v7, %s944_s27  ;;  %428 = vrot.lane.b32.xlu0 %v405_v7, %s945_s28 }
  0x2a   : >> { %416 = vrot.lane.b32.xlu2 %v405_v7, %s946_s29 }
  0x31   : >> { %811 = vrot.lane.b32.xlu0 %v800_v6, %s947_s30  ;;  %410 = vrot.lane.b32.xlu1 %v405_v7, %s947_s30 }
  0x32   : >> { %816 = vrot.lane.b32.xlu2 %v815_v8, %s948_s6 }
  0x39   : >> { %365 = vrot.lane.b32.xlu1 %v275_v5, %s949_s7 }
  0x7c   : >> { %v807_v9 = vpop.permute.xlu2 %806 }
  0x7d   : >> { %v808_v15 = vunpack.i.l.bf16 %v807_v9  ;;  %v809_v19 = vunpack.i.h.bf16 %v807_v9 }
  0x84   : >> { %v417_v22 = vpop.permute.xlu2 %416 }
  0x85   : >> { %v419_v23 = vsel %vm418_vm4, %v809_v19, %v417_v22 }
  0x86   : >> { %v850_v24 = vpack.i.bf16 %v417_v22, %v419_v23 }
  0x8c   : >> { %v1073_v35 = vpop.permute.xlu2 %816 }
  0x8d   : >> { %v819_v7 = vunpack.i.h.bf16 %v1073_v35 }
  0x93   : >> { %v802_v10 = vpop.permute.xlu1 %801  ;;  %v797_v11 = vpop.permute.xlu0 %796 }
  0x94   : >> { %v803_v12 = vunpack.i.l.bf16 %v802_v10  ;;  %v798_v13 = vunpack.i.l.bf16 %v797_v11  ;;  %v804_v16 = vunpack.i.h.bf16 %v802_v10  ;;  %v799_v32 = vunpack.i.h.bf16 %v797_v11 }
  0x96   : >> { %308 = vmatpush.msra.mxu0 %v798_v13  ;;  %v820_v14 = vpack.i.bf16 %v803_v12, %v798_v13 }
  0x98   : >> { %821 = vrot.lane.b32.xlu2 %v820_v14, %s949_s7  ;;  %309 = vmatpush.msra.mxu0 %v803_v12 }
  0x9a   : >> { %310 = vmatpush.msra.mxu0 %v808_v15 }
  0x9b   : >> { %v423_v17 = vpop.permute.xlu1 %422  ;;  %v429_v18 = vpop.permute.xlu0 %428 }
  0x9c   : >> { %v425_v20 = vsel %vm424_vm3, %v804_v16, %v423_v17  ;;  %v431_v33 = vsel %vm430_vm6, %v799_v32, %v429_v18  ;;  %v717_v16 = vld [vmem:[%s1079_s16 + $0x18] sm:$0xff]  ;;  %v720_v32 = vld [vmem:[%s1079_s16 + $0x20] sm:$0xff] }
  0x9d   : >> { %v865_v21 = vpack.i.bf16 %v423_v17, %v425_v20  ;;  %v840_v34 = vpack.i.bf16 %v429_v18, %v431_v33 }
  0x9f   : >> { %846 = vrot.lane.b32.xlu1 %v865_v21, %s948_s6 }
  0xa0   : >> { %826 = vrot.lane.b32.xlu2 %v820_v14, %s950_s10 }
  0xa3   : >> { %v812_v25 = vpop.permute.xlu0 %811  ;;  %v411_v26 = vpop.permute.xlu1 %410 }
  0xa4   : >> { %v814_v27 = vunpack.i.h.bf16 %v812_v25  ;;  %v813_v28 = vunpack.i.l.bf16 %v812_v25 }
  0xa6   : >> { %v413_v29 = vsel %vm412_vm5, %v814_v27, %v411_v26  ;;  %311 = vmatpush.msra.mxu0 %v813_v28  ;;  %v830_v30 = vpack.i.bf16 %v813_v28, %v808_v15 }
  0xa7   : >> { %v855_v31 = vpack.i.bf16 %v411_v26, %v413_v29  ;;  %851 = vrot.lane.b32.xlu1 %v850_v24, %s948_s6 }
  0xa8   : >> { %831 = vrot.lane.b32.xlu0 %v830_v30, %s949_s7  ;;  %312 = vmatpush.msra.mxu0 %v275_v5 }
  0xa9   : >> { %856 = vrot.lane.b32.xlu2 %v855_v31, %s948_s6  ;;  %709 = vmatmul.msk.f32.vlgmr.msra.gmra.mxu0 %vm293_vm7, %v292_v45 }
  0xab   : >> { %v366_v42 = vpop.permute.xlu1 %365 }
  0xaf   : >> { %866 = vrot.lane.b32.xlu1 %v865_v21, %s951_s11 }
  0xb0   : >> { %836 = vrot.lane.b32.xlu0 %v830_v30, %s950_s10 }
  0xb1   : >> { %322 = vrot.lane.b32.xlu2 %v275_v5, %s950_s10 }
  0xb7   : >> { %876 = vrot.lane.b32.xlu1 %v855_v31, %s951_s11 }
  0xb8   : >> { %841 = vrot.lane.b32.xlu0 %v840_v34, %s948_s6 }
  0xb9   : >> { %881 = vrot.lane.b32.xlu2 %v815_v8, %s951_s11  ;;  %v818_v8 = vunpack.i.l.bf16 %v1073_v35 }
  0xbb   : >> { %v457_v18 = vsel %vm456_vm8, %v818_v8, %v819_v7 }
  0xc0   : >> { %861 = vrot.lane.b32.xlu0 %v840_v34, %s951_s11 }
  0xc8   : >> { %871 = vrot.lane.b32.xlu0 %v850_v24, %s951_s11 }
  0xf2   : >> { %v822_v36 = vpop.permute.xlu2 %821 }
  0xf3   : >> { %v823_v37 = vunpack.i.l.bf16 %v822_v36  ;;  %v824_v38 = vunpack.i.h.bf16 %v822_v36 }
  0xf5   : >> { %394 = vmatpush.msra.mxu2 %v823_v37 }
  0xf7   : >> { %395 = vmatpush.msra.mxu2 %v824_v38 }
  0xfa   : >> { %v827_v39 = vpop.permute.xlu2 %826 }
  0xfb   : >> { %v828_v40 = vunpack.i.l.bf16 %v827_v39  ;;  %v829_v41 = vunpack.i.h.bf16 %v827_v39 }
  0xfd   : >> { %351 = vmatpush.msra.mxu1 %v828_v40 }
  0xff   : >> { %352 = vmatpush.msra.mxu1 %v829_v41 }
 0x103   : >> { %v857_v48 = vpop.permute.xlu2 %856 }
 0x104   : >> { %v859_v0 = vunpack.i.h.bf16 %v857_v48  ;;  %v858_v2 = vunpack.i.l.bf16 %v857_v48 }
 0x106   : >> { %v458_v11 = vsel %vm456_vm8, %v858_v2, %v859_v0 }
 0x10b   : >> { %v323_v54 = vpop.permute.xlu2 %322 }
 0x111   : >> { %v847_v43 = vpop.permute.xlu1 %846 }
 0x112   : >> { %v849_v57 = vunpack.i.h.bf16 %v847_v43  ;;  %v848_v58 = vunpack.i.l.bf16 %v847_v43  ;;  %v952_v43 = vmov (%p266_p10), 0  }
 0x113   : >> { %v882_v20 = vpop.permute.xlu2 %881  ;;  %885 = vset.pattern.permute.xlu0 (%p266_p10), %v952_v43 }
 0x114   : >> { %v460_v6 = vsel %vm456_vm8, %v848_v58, %v849_v57  ;;  %v884_v23 = vunpack.i.h.bf16 %v882_v20  ;;  %v883_v24 = vunpack.i.l.bf16 %v882_v20  ;;  %552 = vperm.xlu0 (%p266_p10), %885, %v1044_v1  }
 0x116   : >> { %v516_v31 = vsel %vm515_vm9, %v883_v24, %v884_v23 }
 0x119   : >> { %v852_v52 = vpop.permute.xlu1 %851 }
 0x11a   : >> { %v832_v44 = vpop.permute.xlu0 %831  ;;  %v854_v61 = vunpack.i.h.bf16 %v852_v52  ;;  %v853_v62 = vunpack.i.l.bf16 %v852_v52 }
 0x11b   : >> { %v833_v46 = vunpack.i.l.bf16 %v832_v44  ;;  %v834_v47 = vunpack.i.h.bf16 %v832_v44 }
 0x11c   : >> { %v459_v9 = vsel %vm456_vm8, %v853_v62, %v854_v61 }
 0x11d   : >> { %396 = vmatpush.msra.mxu2 %v833_v46 }
 0x11f   : >> { %397 = vmatpush.msra.mxu2 %v834_v47  ;;  %v886_v47 = vld [vmem:[%s1138_s4] ss:$0 sm:$0xff] (%p266_p10) }
 0x121   : >> { %398 = vmatpush.msra.mxu2 %v366_v42  ;;  %v867_v5 = vpop.permute.xlu1 %866 }
 0x122   : >> { %v837_v50 = vpop.permute.xlu0 %836  ;;  %715 = vmatmul.msk.f32.vlgmr.msra.gmra.mxu2 %vm293_vm7, %v714_v49  ;;  %v869_v12 = vunpack.i.h.bf16 %v867_v5  ;;  %v868_v13 = vunpack.i.l.bf16 %v867_v5 }
 0x123   : >> { %v838_v51 = vunpack.i.l.bf16 %v837_v50  ;;  %v839_v53 = vunpack.i.h.bf16 %v837_v50 }
 0x124   : >> { %v519_v19 = vsel %vm515_vm9, %v868_v13, %v869_v12 }
 0x125   : >> { %353 = vmatpush.msra.mxu1 %v838_v51 }
 0x126   : >> { %v314_v33 = vpop.f32.mrf.mxu0 }
 0x127   : >> { %354 = vmatpush.msra.mxu1 %v839_v53  ;;  %v317_v34 = vadd.f32 %v937_v4, %v314_v33 }
 0x129   : >> { %355 = vmatpush.msra.mxu1 %v323_v54  ;;  %v877_v21 = vpop.permute.xlu1 %876 }
 0x12a   : >> { %v842_v56 = vpop.permute.xlu0 %841  ;;  %712 = vmatmul.msk.f32.vlgmr.msra.gmra.mxu1 %vm293_vm7, %v711_v55  ;;  %v879_v25 = vunpack.i.h.bf16 %v877_v21  ;;  %v878_v26 = vunpack.i.l.bf16 %v877_v21 }
 0x12b   : >> { %v844_v59 = vunpack.i.h.bf16 %v842_v56  ;;  %v843_v60 = vunpack.i.l.bf16 %v842_v56 }
 0x12c   : >> { %v517_v30 = vsel %vm515_vm9, %v878_v26, %v879_v25 }
 0x12d   : >> { %v461_v63 = vsel %vm456_vm8, %v843_v60, %v844_v59 }
 0x12e   : >> { %481 = vmatpush.msra.mxu3 %v461_v63 }
 0x130   : >> { %482 = vmatpush.msra.mxu3 %v460_v6 }
 0x132   : >> { %v862_v10 = vpop.permute.xlu0 %861  ;;  %483 = vmatpush.msra.mxu3 %v459_v9 }
 0x133   : >> { %v864_v14 = vunpack.i.h.bf16 %v862_v10  ;;  %v863_v15 = vunpack.i.l.bf16 %v862_v10 }
 0x134   : >> { %484 = vmatpush.msra.mxu3 %v458_v11 }
 0x135   : >> { %v520_v17 = vsel %vm515_vm9, %v863_v15, %v864_v14 }
 0x136   : >> { %540 = vmatpush.msrb.mxu0 %v520_v17  ;;  %485 = vmatpush.msra.mxu3 %v457_v18 }
 0x137   : >> { %718 = vmatmul.msk.f32.vlgmr.msra.gmra.mxu3 %vm293_vm7, %v717_v16 }
 0x138   : >> { %541 = vmatpush.msrb.mxu0 %v519_v19 }
 0x13a   : >> { %v872_v22 = vpop.permute.xlu0 %871 }
 0x13b   : >> { %v874_v27 = vunpack.i.h.bf16 %v872_v22  ;;  %v873_v28 = vunpack.i.l.bf16 %v872_v22 }
 0x13d   : >> { %v518_v29 = vsel %vm515_vm9, %v873_v28, %v874_v27 }
 0x13e   : >> { %542 = vmatpush.msrb.mxu0 %v518_v29 }
 0x140   : >> { %543 = vmatpush.msrb.mxu0 %v517_v30 }
 0x142   : >> { %544 = vmatpush.msrb.mxu0 %v516_v31 }
 0x143   : >> { %721 = vmatmul.msk.f32.vlgmr.msrb.gmra.mxu0 %vm293_vm7, %v720_v32 }
 0x186   : > { %v553_v44 = vpop.permute.xlu0 (%p266_p10), %552 }
 0x1a5   : >> { %v400_v37 = vpop.f32.mrf.mxu2 }
 0x1a7   : >> { %v357_v35 = vpop.f32.mrf.mxu1 }
 0x1a8   : >> { %v360_v36 = vadd.f32 %v357_v35, %v317_v34 }
 0x1aa   : >> { %v403_v38 = vadd.f32 %v400_v37, %v360_v36 }
 0x1ba   : >> { %v487_v39 = vpop.f32.mrf.mxu3 }
 0x1bb   : >> { %v490_v40 = vadd.f32 %v487_v39, %v403_v38 }
 0x1bf   : > { %268 = sbr.rel (!%p266_p10) target bundleno = 27 (0x1b), region = 91 }
 0x1c0   : >> { %v546_v41 = vpop.f32.mrf.mxu0 }
 0x1c1   : >> { %v549_v42 = vadd.f32 %v546_v41, %v490_v40  }
 0x1c3   : >> { %v1141_v4 = vmov %v549_v42  ;;  %v555_v45 = vadd.f32 (%p266_p10), %v553_v44, %v549_v42 }
 0x1c4   : > { %v558_v4 = vperm.slane %v1047_v3, 0 }
 0x1c5   : > { %vm556_vm10 = vcmp.ge.f32.partialorder %v555_v45, 0.0 }
 0x1c6   : > { %560 = vperm.xlu0 %885, %v558_v4  }
 0x238   : > { %v561_v46 = vpop.permute.xlu0 %560 }
 0x239   : > { %v563_v48 = vmul.f32 %v561_v46, %v555_v45 }
 0x23b   : > { %v564_v49 = vsel %vm556_vm10, %v555_v45, %v563_v48 }
 0x23c   : > { %v569_v50 = vmul.f32 %v886_v47, %v564_v49 }
 0x23e   : > { %571 = vrot.lane.b32.xlu1 %v569_v50, %s953_s17 }
 0x2b0   : > { %v572_v51 = vpop.permute.xlu1 %571 }
 0x2b1   : > { %575 = vst.msk [vmem:[%s1037_s14] sm:$0xff] %vm574_vm11, %v572_v51 }
 0x2b2 PF: > { %578 = sbr.rel (!%p1030_p9) target bundleno = 695 (0x2b7), region = 55  ;;  %vm580_vm12 = vcmask (%p1030_p9), 228352   ;;  %v954_v1 = vmov (%p1030_p9), 0.0  }
 0x2b3   : > { %579 = vst [vmem:[%s1037_s14] sm:$0xff] (%p1030_p9), %v954_v1 }
 0x2b4   : > { %581 = vst.msk [vmem:[%s1037_s14 + $0x8] sm:$0xff] (%p1030_p9), %vm580_vm12, %v954_v1 }
 0x2b7 PF: > { %s17_s24 = sadd.s32 1, %s933_s24   ;;  %s1142_s20 = smov %s925_s22 }
 0x2b8   : > { %p14_p11 = scmp.ge.s32.totalorder %s17_s24, 26   ;;  %s1143_s21 = smov %s929_s23 }
 0x2b9   : > { %s1144_s22 = smov %s1147_s3  ;;  %s1145_s23 = smov %s1151_s25 }
 0x2ba   :  { %16 = sbr.rel (!%p14_p11) target bundleno = 3 (0x3), region = 102 }

// kernel: down_forward.5
= control target key start
LH: loop header
LB: loop body
LE: loop exit
PB: predicated region body
PF: predicated region fallthrough
CT: control target
= control target key end

     0   :  { %s1085_s23 = smov 0   ;;  %s1087_s24 = smov 0   ;;  %s1237_s0 = inlined_call_operand.vmem [shape: f32[2,12,8,156], index: 0, kind: input, shape index: {}]   ;;  %s1238_s1 = inlined_call_operand.vmem [shape: f32[25,8,40], index: 1, kind: input, shape index: {}]   ;;  %s1239_s2 = inlined_call_operand.vmem [shape: f32[8,1], index: 2, kind: input, shape index: {}]   ;;  %s1240_s3 = inlined_call_operand.<no memory space> [shape: f32[1,1], index: 3, kind: input, shape index: {}]   ;;  %s1241_s4 = inlined_call_operand.vmem [shape: f32[1,96], index: 4, kind: input, shape index: {}]   ;;  %s1242_s5 = inlined_call_operand.vmem [shape: f32[2,12,8,156], index: 5, kind: input, shape index: {}]   ;;  %s1243_s6 = inlined_call_operand.vmem [shape: f32[2,12,8,156], index: 6, kind: output, shape index: {}]  }
   0x1   :  { %v11_v0 = vstv %s1240_s3  ;;  %s1089_s25 = smov 0   ;;  %s1091_s26 = smov 0  }
   0x2   :  { %12 = vst [vmem:[#allocation2] sm:$0x1] %v11_v0  ;;  %s1093_s27 = smov 0  }
   0x3 LB: > { %s27_s3 = sadd.s32 1, %s1016_s25  ;;  %s30_s28 = sadd.s32 1, %s1020_s26  ;;  %s1024_s27 = sphi %s1093_s27, %s18_s27   ;;  %s1020_s26 = sphi %s1091_s26, %s1249_s26   ;;  %s1016_s25 = sphi %s1089_s25, %s1248_s25   ;;  %s1012_s24 = sphi %s1087_s24, %s1247_s24   ;;  %s1008_s23 = sphi %s1085_s23, %s1246_s23  }
   0x4   : > { %p28_p0 = scmp.ge.s32.totalorder %s27_s3, 12  ;;  %p789_p1 = scmp.ge.s32.totalorder %s1024_s27, 1 }
   0x5   : > { %p244_p2 = scmp.lt.s32.totalorder %s1024_s27, 25 }
   0x6   : > { %s1251_s3 = smov (%p28_p0, %s27_s3), 0  ;;  %s1253_s28 = smov (!%p28_p0, %s30_s28), %s1020_s26 }
   0x7   : > { %p245_p3 = pnand %p789_p1, %p244_p2  ;;  %p32_p4 = scmp.ge.s32.totalorder %s1253_s28, 2 }
   0x8   : > { %p287_p5 = scmp.lt.s32.totalorder (!%p245_p3), %s1012_s24, 1  ;;  %p294_p6 = scmp.lt.s32.totalorder (!%p245_p3), %s1008_s23, 11 }
   0x9   : > { %s1255_s28 = smov (%p32_p4, %s1253_s28), 0  ;;  %248 = sbr.rel (%p245_p3) target bundleno = 697 (0x2b9), region = 44 }
   0xa   : > { %s795_s29 = sadd.s32 (!%p245_p3), 4294967294, %s1008_s23  ;;  %p311_p7 = scmp.ge.s32.totalorder (!%p245_p3), %s1008_s23, 2 }
   0xb   : > { %p312_p8 = scmp.lt.s32.totalorder (!%p245_p3), %s1008_s23, 10 }
   0xd   : > { %p1127_p9 = pnand (!%p245_p3), %p312_p8, %p311_p7 }
   0xe   : > { %s1257_s24 = smov (!%p287_p5, %s1012_s24), 1 }
   0xf   : > { %s295_s30 = scalar_select %p294_p6, %s1008_s23, 11 }
  0x10   : > { %s815_s7 = smul.u32 192, %s1257_s24 }
  0x11   : > { %s791_s8 = sshll.u32 %s295_s30, 1  ;;  %s816_s9 = smul.u32 24, %s1257_s24 }
  0x12   : > { %s1125_s12 = scalar_lea.vmem %s1237_s0, %s815_s7  ;;  %316 = sbr.rel (%p1127_p9) target bundleno = 692 (0x2b4), region = 48 }
  0x13   : > { %s298_s14 = sadd.s32 %s816_s9, %s791_s8  ;;  %s1155_s30 = smov (!%p1127_p9), 0  }
  0x14   : > { %s792_s15 = sshll.u32 %s298_s14, 3 }
  0x15   : > { %s1134_s18 = scalar_lea.vmem %s1242_s5, %s792_s15  ;;  %s1139_s21 = scalar_lea.vmem %s1243_s6, %s792_s15 }
  0x17   : > { %vm317_vm0 = vcmask 211968   ;;  %vm319_vm1 = vcmask 1048528   ;;  %vm321_vm2 = vcmask 228352   ;;  %v1146_v1 = vld [vmem:[%s1239_s2] sm:$0xff]  ;;  %v1034_v2 = vmov 0.0  }
  0x18   : > { %318 = vst.msk [vmem:[%s1139_s21] sm:$0xff] %vm317_vm0, %v1034_v2  ;;  %v1149_v3 = vld [vmem:[#allocation2] sm:$0x1]  ;;  %v1153_v4 = vmov 0.0  }
  0x19   : > { %320 = vst.msk [vmem:[%s1139_s21] sm:$0xff] %vm319_vm1, %v1034_v2 }
  0x1a   : > { %322 = vst.msk [vmem:[%s1139_s21 + $0x8] sm:$0xff] %vm321_vm2, %v1034_v2 }
  0x1b LB: >> { %s332_s7 = sadd.s32 %s1032_s30, %s795_s29  ;;  %s1035_s10 = smov 125   ;;  %vm485_vm3 = vcmask 1022976   ;;  %vm479_vm4 = vcmask 1031168   ;;  %vm473_vm5 = vcmask 1039360   ;;  %vm491_vm6 = vcmask 1014784   ;;  %s1032_s30 = sphi %s1155_s30, %s330_s30   ;;  %v1028_v4 = vphi %v1153_v4, %v1245_v4  }
  0x1c   : >> { %s814_s8 = sshll.u32 %s332_s7, 4  ;;  %s1036_s11 = smov 124   ;;  %vm354_vm7 = vcmask 326656   ;;  %vm517_vm8 = vcmask 752640   ;;  %vm576_vm9 = vcmask 654336  }
  0x1d   : >> { %s335_s9 = scalar_lea.vmem %s1125_s12, %s814_s8  ;;  %s1037_s14 = smov 126  }
  0x1e   : >> { %v336_v5 = vld [vmem:[%s335_s9] sm:$0xff]  ;;  %v466_v7 = vld [vmem:[%s335_s9 + $0x8] sm:$0xff]  ;;  %s1038_s15 = smov 127   ;;  %s1039_s16 = smov 92  }
  0x1f   : >> { %v891_v6 = vpack.i.bf16 %v336_v5, %v336_v5  ;;  %v906_v8 = vpack.i.bf16 %v466_v7, %v336_v5  ;;  %s1040_s17 = smov 104   ;;  %s1041_s19 = smov 116  }
  0x20   : >> { %s1042_s20 = smov 80   ;;  %s798_s22 = smul.u32 40, %s1032_s30 }
  0x21   : >> { %892 = vrot.lane.b32.xlu1 %v891_v6, %s1035_s10  ;;  %887 = vrot.lane.b32.xlu0 %v891_v6, %s1036_s11  ;;  %s330_s30 = sadd.s32 1, %s1032_s30  }
  0x22   : >> { %897 = vrot.lane.b32.xlu2 %v891_v6, %s1037_s14  ;;  %s1181_s8 = scalar_lea.vmem %s1238_s1, %s798_s22  ;;  %p327_p10 = scmp.ge.s32.totalorder %s330_s30, 5  }
  0x23   : >> { %v353_v45 = vld [vmem:[%s1181_s8] sm:$0xff]  ;;  %v804_v49 = vld [vmem:[%s1181_s8 + $0x10] sm:$0xff]  ;;  %v801_v55 = vld [vmem:[%s1181_s8 + $0x8] sm:$0xff]  ;;  %s1044_s9 = smov (%p327_p10), 102   ;;  %s1045_s23 = smov (%p327_p10), 26   ;;  %vm641_vm11 = vcmask (%p327_p10), 998608  }
  0x29   : >> { %483 = vrot.lane.b32.xlu1 %v466_v7, %s1035_s10  ;;  %489 = vrot.lane.b32.xlu0 %v466_v7, %s1036_s11 }
  0x2a   : >> { %477 = vrot.lane.b32.xlu2 %v466_v7, %s1037_s14 }
  0x31   : >> { %902 = vrot.lane.b32.xlu0 %v891_v6, %s1038_s15  ;;  %471 = vrot.lane.b32.xlu1 %v466_v7, %s1038_s15 }
  0x32   : >> { %907 = vrot.lane.b32.xlu2 %v906_v8, %s1039_s16 }
  0x39   : >> { %426 = vrot.lane.b32.xlu1 %v336_v5, %s1040_s17 }
  0x7c   : >> { %v898_v9 = vpop.permute.xlu2 %897 }
  0x7d   : >> { %v899_v15 = vunpack.i.l.bf16 %v898_v9  ;;  %v900_v19 = vunpack.i.h.bf16 %v898_v9 }
  0x84   : >> { %v478_v22 = vpop.permute.xlu2 %477 }
  0x85   : >> { %v480_v23 = vsel %vm479_vm4, %v900_v19, %v478_v22 }
  0x86   : >> { %v941_v24 = vpack.i.bf16 %v478_v22, %v480_v23 }
  0x8c   : >> { %v1175_v35 = vpop.permute.xlu2 %907 }
  0x8d   : >> { %v910_v7 = vunpack.i.h.bf16 %v1175_v35 }
  0x93   : >> { %v893_v10 = vpop.permute.xlu1 %892  ;;  %v888_v11 = vpop.permute.xlu0 %887 }
  0x94   : >> { %v894_v12 = vunpack.i.l.bf16 %v893_v10  ;;  %v889_v13 = vunpack.i.l.bf16 %v888_v11  ;;  %v895_v16 = vunpack.i.h.bf16 %v893_v10  ;;  %v890_v32 = vunpack.i.h.bf16 %v888_v11 }
  0x96   : >> { %369 = vmatpush.msra.mxu0 %v889_v13  ;;  %v911_v14 = vpack.i.bf16 %v894_v12, %v889_v13 }
  0x98   : >> { %912 = vrot.lane.b32.xlu2 %v911_v14, %s1040_s17  ;;  %370 = vmatpush.msra.mxu0 %v894_v12 }
  0x9a   : >> { %371 = vmatpush.msra.mxu0 %v899_v15 }
  0x9b   : >> { %v484_v17 = vpop.permute.xlu1 %483  ;;  %v490_v18 = vpop.permute.xlu0 %489 }
  0x9c   : >> { %v486_v20 = vsel %vm485_vm3, %v895_v16, %v484_v17  ;;  %v492_v33 = vsel %vm491_vm6, %v890_v32, %v490_v18  ;;  %v807_v16 = vld [vmem:[%s1181_s8 + $0x18] sm:$0xff]  ;;  %v810_v32 = vld [vmem:[%s1181_s8 + $0x20] sm:$0xff] }
  0x9d   : >> { %v956_v21 = vpack.i.bf16 %v484_v17, %v486_v20  ;;  %v931_v34 = vpack.i.bf16 %v490_v18, %v492_v33 }
  0x9f   : >> { %937 = vrot.lane.b32.xlu1 %v956_v21, %s1039_s16 }
  0xa0   : >> { %917 = vrot.lane.b32.xlu2 %v911_v14, %s1041_s19 }
  0xa3   : >> { %v903_v25 = vpop.permute.xlu0 %902  ;;  %v472_v26 = vpop.permute.xlu1 %471 }
  0xa4   : >> { %v905_v27 = vunpack.i.h.bf16 %v903_v25  ;;  %v904_v28 = vunpack.i.l.bf16 %v903_v25 }
  0xa6   : >> { %v474_v29 = vsel %vm473_vm5, %v905_v27, %v472_v26  ;;  %372 = vmatpush.msra.mxu0 %v904_v28  ;;  %v921_v30 = vpack.i.bf16 %v904_v28, %v899_v15 }
  0xa7   : >> { %v946_v31 = vpack.i.bf16 %v472_v26, %v474_v29  ;;  %942 = vrot.lane.b32.xlu1 %v941_v24, %s1039_s16 }
  0xa8   : >> { %922 = vrot.lane.b32.xlu0 %v921_v30, %s1040_s17  ;;  %373 = vmatpush.msra.mxu0 %v336_v5 }
  0xa9   : >> { %947 = vrot.lane.b32.xlu2 %v946_v31, %s1039_s16  ;;  %799 = vmatmul.msk.f32.vlgmr.msra.gmra.mxu0 %vm354_vm7, %v353_v45 }
  0xab   : >> { %v427_v42 = vpop.permute.xlu1 %426 }
  0xaf   : >> { %957 = vrot.lane.b32.xlu1 %v956_v21, %s1042_s20 }
  0xb0   : >> { %927 = vrot.lane.b32.xlu0 %v921_v30, %s1041_s19 }
  0xb1   : >> { %383 = vrot.lane.b32.xlu2 %v336_v5, %s1041_s19 }
  0xb7   : >> { %967 = vrot.lane.b32.xlu1 %v946_v31, %s1042_s20 }
  0xb8   : >> { %932 = vrot.lane.b32.xlu0 %v931_v34, %s1039_s16 }
  0xb9   : >> { %972 = vrot.lane.b32.xlu2 %v906_v8, %s1042_s20  ;;  %v909_v8 = vunpack.i.l.bf16 %v1175_v35 }
  0xbb   : >> { %v518_v18 = vsel %vm517_vm8, %v909_v8, %v910_v7 }
  0xc0   : >> { %952 = vrot.lane.b32.xlu0 %v931_v34, %s1042_s20 }
  0xc8   : >> { %962 = vrot.lane.b32.xlu0 %v941_v24, %s1042_s20 }
  0xf2   : >> { %v913_v36 = vpop.permute.xlu2 %912 }
  0xf3   : >> { %v914_v37 = vunpack.i.l.bf16 %v913_v36  ;;  %v915_v38 = vunpack.i.h.bf16 %v913_v36 }
  0xf5   : >> { %455 = vmatpush.msra.mxu2 %v914_v37 }
  0xf7   : >> { %456 = vmatpush.msra.mxu2 %v915_v38 }
  0xfa   : >> { %v918_v39 = vpop.permute.xlu2 %917 }
  0xfb   : >> { %v919_v40 = vunpack.i.l.bf16 %v918_v39  ;;  %v920_v41 = vunpack.i.h.bf16 %v918_v39 }
  0xfd   : >> { %412 = vmatpush.msra.mxu1 %v919_v40 }
  0xff   : >> { %413 = vmatpush.msra.mxu1 %v920_v41 }
 0x103   : >> { %v948_v48 = vpop.permute.xlu2 %947 }
 0x104   : >> { %v950_v0 = vunpack.i.h.bf16 %v948_v48  ;;  %v949_v2 = vunpack.i.l.bf16 %v948_v48  ;;  %v977_v48 = vld [vmem:[%s1241_s4] ss:$0 sm:$0xff] (%p327_p10) }
 0x106   : >> { %v519_v11 = vsel %vm517_vm8, %v949_v2, %v950_v0 }
 0x10b   : >> { %v384_v54 = vpop.permute.xlu2 %383 }
 0x111   : >> { %v938_v43 = vpop.permute.xlu1 %937 }
 0x112   : >> { %v940_v57 = vunpack.i.h.bf16 %v938_v43  ;;  %v939_v58 = vunpack.i.l.bf16 %v938_v43  ;;  %v631_v43 = vld [vmem:[%s1134_s18] sm:$0xff] (%p327_p10) }
 0x113   : >> { %v973_v20 = vpop.permute.xlu2 %972  ;;  %633 = vrot.lane.b32.xlu1 (%p327_p10), %v631_v43, %s1044_s9 }
 0x114   : >> { %v521_v6 = vsel %vm517_vm8, %v939_v58, %v940_v57  ;;  %v975_v23 = vunpack.i.h.bf16 %v973_v20  ;;  %v974_v24 = vunpack.i.l.bf16 %v973_v20 }
 0x116   : >> { %v577_v31 = vsel %vm576_vm9, %v974_v24, %v975_v23 }
 0x119   : >> { %v943_v52 = vpop.permute.xlu1 %942 }
 0x11a   : >> { %v923_v44 = vpop.permute.xlu0 %922  ;;  %v945_v61 = vunpack.i.h.bf16 %v943_v52  ;;  %v944_v62 = vunpack.i.l.bf16 %v943_v52 }
 0x11b   : >> { %v924_v46 = vunpack.i.l.bf16 %v923_v44  ;;  %v925_v47 = vunpack.i.h.bf16 %v923_v44  ;;  %v1043_v44 = vmov (%p327_p10), 0  }
 0x11c   : >> { %v520_v9 = vsel %vm517_vm8, %v944_v62, %v945_v61  ;;  %976 = vset.pattern.permute.xlu0 (%p327_p10), %v1043_v44 }
 0x11d   : >> { %457 = vmatpush.msra.mxu2 %v924_v46  ;;  %613 = vperm.xlu0 (%p327_p10), %976, %v1146_v1  }
 0x11f   : >> { %458 = vmatpush.msra.mxu2 %v925_v47 }
 0x121   : >> { %459 = vmatpush.msra.mxu2 %v427_v42  ;;  %v958_v5 = vpop.permute.xlu1 %957 }
 0x122   : >> { %v928_v50 = vpop.permute.xlu0 %927  ;;  %805 = vmatmul.msk.f32.vlgmr.msra.gmra.mxu2 %vm354_vm7, %v804_v49  ;;  %v960_v12 = vunpack.i.h.bf16 %v958_v5  ;;  %v959_v13 = vunpack.i.l.bf16 %v958_v5 }
 0x123   : >> { %v929_v51 = vunpack.i.l.bf16 %v928_v50  ;;  %v930_v53 = vunpack.i.h.bf16 %v928_v50 }
 0x124   : >> { %v580_v19 = vsel %vm576_vm9, %v959_v13, %v960_v12 }
 0x125   : >> { %414 = vmatpush.msra.mxu1 %v929_v51 }
 0x126   : >> { %v375_v33 = vpop.f32.mrf.mxu0 }
 0x127   : >> { %415 = vmatpush.msra.mxu1 %v930_v53  ;;  %v378_v34 = vadd.f32 %v1028_v4, %v375_v33 }
 0x129   : >> { %416 = vmatpush.msra.mxu1 %v384_v54  ;;  %v968_v21 = vpop.permute.xlu1 %967 }
 0x12a   : >> { %v933_v56 = vpop.permute.xlu0 %932  ;;  %802 = vmatmul.msk.f32.vlgmr.msra.gmra.mxu1 %vm354_vm7, %v801_v55  ;;  %v970_v25 = vunpack.i.h.bf16 %v968_v21  ;;  %v969_v26 = vunpack.i.l.bf16 %v968_v21 }
 0x12b   : >> { %v935_v59 = vunpack.i.h.bf16 %v933_v56  ;;  %v934_v60 = vunpack.i.l.bf16 %v933_v56 }
 0x12c   : >> { %v578_v30 = vsel %vm576_vm9, %v969_v26, %v970_v25 }
 0x12d   : >> { %v522_v63 = vsel %vm517_vm8, %v934_v60, %v935_v59 }
 0x12e   : >> { %542 = vmatpush.msra.mxu3 %v522_v63 }
 0x130   : >> { %543 = vmatpush.msra.mxu3 %v521_v6 }
 0x132   : >> { %v953_v10 = vpop.permute.xlu0 %952  ;;  %544 = vmatpush.msra.mxu3 %v520_v9 }
 0x133   : >> { %v955_v14 = vunpack.i.h.bf16 %v953_v10  ;;  %v954_v15 = vunpack.i.l.bf16 %v953_v10 }
 0x134   : >> { %545 = vmatpush.msra.mxu3 %v519_v11 }
 0x135   : >> { %v581_v17 = vsel %vm576_vm9, %v954_v15, %v955_v14 }
 0x136   : >> { %601 = vmatpush.msrb.mxu0 %v581_v17  ;;  %546 = vmatpush.msra.mxu3 %v518_v18 }
 0x137   : >> { %808 = vmatmul.msk.f32.vlgmr.msra.gmra.mxu3 %vm354_vm7, %v807_v16 }
 0x138   : >> { %602 = vmatpush.msrb.mxu0 %v580_v19 }
 0x13a   : >> { %v963_v22 = vpop.permute.xlu0 %962 }
 0x13b   : >> { %v965_v27 = vunpack.i.h.bf16 %v963_v22  ;;  %v964_v28 = vunpack.i.l.bf16 %v963_v22 }
 0x13d   : >> { %v579_v29 = vsel %vm576_vm9, %v964_v28, %v965_v27 }
 0x13e   : >> { %603 = vmatpush.msrb.mxu0 %v579_v29 }
 0x140   : >> { %604 = vmatpush.msrb.mxu0 %v578_v30 }
 0x142   : >> { %605 = vmatpush.msrb.mxu0 %v577_v31 }
 0x143   : >> { %811 = vmatmul.msk.f32.vlgmr.msrb.gmra.mxu0 %vm354_vm7, %v810_v32 }
 0x185   : > { %v634_v50 = vpop.permute.xlu1 (%p327_p10), %633 }
 0x18f   : > { %v614_v45 = vpop.permute.xlu0 (%p327_p10), %613 }
 0x1a5   : >> { %v461_v37 = vpop.f32.mrf.mxu2 }
 0x1a7   : >> { %v418_v35 = vpop.f32.mrf.mxu1 }
 0x1a8   : >> { %v421_v36 = vadd.f32 %v418_v35, %v378_v34 }
 0x1aa   : >> { %v464_v38 = vadd.f32 %v461_v37, %v421_v36 }
 0x1ba   : >> { %v548_v39 = vpop.f32.mrf.mxu3 }
 0x1bb   : >> { %v551_v40 = vadd.f32 %v548_v39, %v464_v38 }
 0x1bf   : > { %329 = sbr.rel (!%p327_p10) target bundleno = 27 (0x1b), region = 98 }
 0x1c0   : >> { %v607_v41 = vpop.f32.mrf.mxu0 }
 0x1c1   : >> { %v610_v42 = vadd.f32 %v607_v41, %v551_v40  }
 0x1c3   : >> { %v1245_v4 = vmov %v610_v42  ;;  %v616_v46 = vadd.f32 (%p327_p10), %v614_v45, %v610_v42 }
 0x1c4   : > { %v619_v4 = vperm.slane %v1149_v3, 0 }
 0x1c5   : > { %vm617_vm10 = vcmp.ge.f32.partialorder %v616_v46, 0.0 }
 0x1c6   : > { %621 = vperm.xlu0 %976, %v619_v4  }
 0x238   : > { %v622_v47 = vpop.permute.xlu0 %621 }
 0x239   : > { %v624_v49 = vmul.f32 %v622_v47, %v616_v46 }
 0x23b   : > { %v625_v51 = vsel %vm617_vm10, %v616_v46, %v624_v49 }
 0x23c   : > { %v630_v52 = vmul.f32 %v977_v48, %v625_v51 }
 0x23e   : > { %v636_v53 = vadd.f32 %v634_v50, %v630_v52 }
 0x240   : > { %638 = vrot.lane.b32.xlu1 %v636_v53, %s1045_s23 }
 0x2b2   : > { %v639_v1 = vpop.permute.xlu1 %638 }
 0x2b3   : > { %642 = vst.msk [vmem:[%s1139_s21] sm:$0xff] %vm641_vm11, %v639_v1 }
 0x2b4 PF: > { %645 = sbr.rel (!%p1127_p9) target bundleno = 697 (0x2b9), region = 59  ;;  %vm647_vm12 = vcmask (%p1127_p9), 228352   ;;  %v1046_v3 = vmov (%p1127_p9), 0.0  }
 0x2b5   : > { %646 = vst [vmem:[%s1139_s21] sm:$0xff] (%p1127_p9), %v1046_v3 }
 0x2b6   : > { %648 = vst.msk [vmem:[%s1139_s21 + $0x8] sm:$0xff] (%p1127_p9), %vm647_vm12, %v1046_v3 }
 0x2b9 PF: > { %s18_s27 = sadd.s32 1, %s1024_s27   ;;  %s1246_s23 = smov %s1016_s25 }
 0x2ba   : > { %p15_p11 = scmp.ge.s32.totalorder %s18_s27, 26   ;;  %s1247_s24 = smov %s1020_s26 }
 0x2bb   : > { %s1248_s25 = smov %s1251_s3  ;;  %s1249_s26 = smov %s1255_s28 }
 0x2bc   :  { %17 = sbr.rel (!%p15_p11) target bundleno = 3 (0x3), region = 109 }

</bundles_post_ra>
